<compile_context>
chip_gen: v7x
topology: tpu7x:2x2x1
jax: 0.10.0
libtpu: 0.0.40
codegen_flags: <defaults>
</compile_context>

<pallas_src>
import jax
import jax.numpy as jnp
import numpy as np
from jax.experimental import pallas as pl
from jax.experimental.pallas import tpu as pltpu

# ---- model hyperparameters (small, consistent with the module) ----
B = 2                                # batch
L = 8                                # sequence length
D_MODEL = 32                         # hidden size
D_KEY = 32                           # total query/key/value width
N_HEAD = 4
D_K = D_KEY // N_HEAD
INV_SCALE = 1.0 / float(D_K) ** 0.5  # compile-time constant (q / sqrt(d_k))


def mha_kernel(x_ref, bias_ref, wqkv_ref, wo_ref, y_ref, attn_ref):
    """Whole MHA forward in one invocation (everything resident in VMEM)."""
    x2d = x_ref[...]                                            # (B*L, D_MODEL) = (16, 32)
    bias = bias_ref[...]                                        # (B, N_HEAD, L, L)

    # Fused Q/K/V projection: one MXU push (16,32) @ (32,96).
    qkv = jnp.dot(x2d, wqkv_ref[...], preferred_element_type=jnp.float32)   # (16, 96)
    qkv3 = qkv.reshape(B, L, 3 * D_KEY)                         # leading-dim split: layout no-op

    o_heads = []     # per-head context, each (B, L, D_K)
    attn_rows = []   # lane pieces of the attention slab, each (B, L), in (head, query) order
    for h in range(N_HEAD):
        q_h = qkv3[:, :, h * D_K:(h + 1) * D_K] * INV_SCALE                 # (B, L, D_K)
        k_h = qkv3[:, :, D_KEY + h * D_K:D_KEY + (h + 1) * D_K]             # (B, L, D_K)
        v_h = qkv3[:, :, 2 * D_KEY + h * D_K:2 * D_KEY + (h + 1) * D_K]     # (B, L, D_K)

        # Scaled dot-product attention for this head, batched over B (leading batch dim).
        s = jnp.einsum('bqd,bkd->bqk', q_h, k_h,
                       preferred_element_type=jnp.float32)                  # (B, L, L)
        s = s + bias[:, h]
        s = s - jnp.max(s, axis=-1, keepdims=True)
        p = jnp.exp(s)
        p = p / jnp.sum(p, axis=-1, keepdims=True)   # exact normalization: rows sum to 1

        o_heads.append(jnp.einsum('bqk,bkd->bqd', p, v_h,
                                  preferred_element_type=jnp.float32))      # (B, L, D_K)
        attn_rows.extend(p[:, q, :] for q in range(L))
        # Attention dropout is identity in eval mode.

    # Lane-dense attention-weight slab (B, N_HEAD*L*L) = (2, 256): one unmasked full store.
    attn_ref[...] = jnp.concatenate(attn_rows, axis=-1)

    # Merge heads back onto the lane dim and run fc_out as one dense (16,32)@(32,32) matmul.
    o = jnp.concatenate(o_heads, axis=-1)                       # (B, L, D_KEY)
    y = jnp.dot(o.reshape(B * L, D_KEY), wo_ref[...],
                preferred_element_type=jnp.float32)             # (B*L, D_MODEL) = (16, 32)
    y3 = y.reshape(B, L, D_MODEL)                               # leading-dim split: layout no-op

    # Lane-dense output slab (B, L*D_MODEL) = (2, 256): one unmasked full store.
    y_ref[...] = jnp.concatenate([y3[:, l, :] for l in range(L)], axis=-1)
    # Output dropout is identity in eval mode.


def multi_head_attention(x, bias, params):
    """x: (B, L, D_MODEL) f32, bias: (B, N_HEAD, L, L) f32 -> (out, attn_weight)."""
    wq_t, wk_t, wv_t, wo_t = params

    # One dense QKV weight (no per-head slicing, no batch tiling): (D_MODEL, 3*D_KEY) = (32, 96).
    w_qkv = jnp.concatenate([wq_t, wk_t, wv_t], axis=1)
    x2d = x.reshape(B * L, D_MODEL)

    vmem = lambda: pl.BlockSpec(memory_space=pltpu.MemorySpace.VMEM)
    y_flat, attn_flat = pl.pallas_call(
        mha_kernel,
        out_shape=(
            jax.ShapeDtypeStruct((B, L * D_MODEL), jnp.float32),      # lane-dense y slab
            jax.ShapeDtypeStruct((B, N_HEAD * L * L), jnp.float32),   # lane-dense attn slab
        ),
        in_specs=[vmem() for _ in range(4)],
        out_specs=(vmem(), vmem()),
    )(x2d, bias, w_qkv, wo_t)

    # Pure layout plumbing back to the module's output shapes.
    y = y_flat.reshape(B, L, D_MODEL)
    attn = attn_flat.reshape(B, N_HEAD, L, L)
    return y, attn


def make_params(key):
    ks = jax.random.split(key, 4)
    s = 0.1
    wq_t = s * jax.random.normal(ks[0], (D_MODEL, D_KEY), jnp.float32)   # pre-transposed: q = x @ Wq^T
    wk_t = s * jax.random.normal(ks[1], (D_MODEL, D_KEY), jnp.float32)
    wv_t = s * jax.random.normal(ks[2], (D_MODEL, D_KEY), jnp.float32)
    wo_t = s * jax.random.normal(ks[3], (D_KEY, D_MODEL), jnp.float32)
    return (wq_t, wk_t, wv_t, wo_t)


def reference_forward(x, bias, params):
    """Pure-JAX reference reproducing the PyTorch MultiHeadAttention forward (dropout = eval)."""
    wq_t, wk_t, wv_t, wo_t = params
    q, k, v = x @ wq_t, x @ wk_t, x @ wv_t
    split = lambda t: t.reshape(B, L, N_HEAD, D_K).transpose(0, 2, 1, 3)   # (B, H, L, D_K)
    qh, kh, vh = split(q), split(k), split(v)
    attn = jnp.einsum('bhqd,bhkd->bhqk', qh / (D_K ** 0.5), kh) + bias
    attn = jax.nn.softmax(attn, axis=-1)
    out = jnp.einsum('bhqk,bhkd->bhqd', attn, vh)
    out = out.transpose(0, 2, 1, 3).reshape(B, L, D_KEY)
    return out @ wo_t, attn


if __name__ == "__main__":
    key = jax.random.PRNGKey(0)
    kx, kb, kp = jax.random.split(key, 3)
    x = jax.random.normal(kx, (B, L, D_MODEL), jnp.float32)
    bias = 0.5 * jax.random.normal(kb, (B, N_HEAD, L, L), jnp.float32)
    params = make_params(kp)

    y, attn = multi_head_attention(x, bias, params)
    jax.block_until_ready((y, attn))

    y_ref, attn_ref = reference_forward(x, bias, params)
    # Default MXU precision (f32 operands pass through the MXU's bf16 path), hence 1e-3.
    np.testing.assert_allclose(np.asarray(attn), np.asarray(attn_ref), rtol=1e-3, atol=1e-3)
    np.testing.assert_allclose(np.asarray(y), np.asarray(y_ref), rtol=1e-3, atol=1e-3)

    print("KERNEL_OK")
</pallas_src>

<mosaic_0001>
module attributes {stable_mosaic.version = 11 : i64} {
  func.func @mha_kernel(%arg0: memref<16x32xf32, #tpu.memory_space<vmem>>, %arg1: memref<2x4x8x8xf32, #tpu.memory_space<vmem>>, %arg2: memref<32x96xf32, #tpu.memory_space<vmem>>, %arg3: memref<32x32xf32, #tpu.memory_space<vmem>>, %arg4: memref<2x256xf32, #tpu.memory_space<vmem>>, %arg5: memref<2x256xf32, #tpu.memory_space<vmem>>) attributes {dimension_semantics = [], scalar_prefetch = 0 : i64, scratch_operands = 0 : i64, tpu.core_type = #tpu.core_type<tc>} {
    %c0 = arith.constant 0 : index
    %c0_0 = arith.constant 0 : index
    %0 = vector.load %arg0[%c0, %c0_0] : memref<16x32xf32, #tpu.memory_space<vmem>>, vector<16x32xf32>
    %c0_1 = arith.constant 0 : index
    %c0_2 = arith.constant 0 : index
    %c0_3 = arith.constant 0 : index
    %c0_4 = arith.constant 0 : index
    %1 = vector.load %arg1[%c0_1, %c0_2, %c0_3, %c0_4] : memref<2x4x8x8xf32, #tpu.memory_space<vmem>>, vector<2x4x8x8xf32>
    %c0_5 = arith.constant 0 : index
    %c0_6 = arith.constant 0 : index
    %2 = vector.load %arg2[%c0_5, %c0_6] : memref<32x96xf32, #tpu.memory_space<vmem>>, vector<32x96xf32>
    %cst = arith.constant dense<0.000000e+00> : vector<16x96xf32>
    %3 = tpu.matmul %0, %2, %cst {dimension_numbers = #tpu.dot_dimension_numbers<[1], [0], [0], [1], [0, 0, 1, 1], [], []>} : vector<16x32xf32>, vector<32x96xf32>, vector<16x96xf32> -> vector<16x96xf32>
    %4 = vector.shape_cast %3 : vector<16x96xf32> to vector<2x8x96xf32>
    %5 = vector.extract_strided_slice %4 {offsets = [0, 0, 0], sizes = [2, 8, 8], strides = [1, 1, 1]} : vector<2x8x96xf32> to vector<2x8x8xf32>
    %cst_7 = arith.constant 0.353553385 : f32
    %6 = vector.broadcast %cst_7 : f32 to vector<2x8x8xf32>
    %7 = arith.mulf %5, %6 : vector<2x8x8xf32>
    %8 = vector.extract_strided_slice %4 {offsets = [0, 0, 32], sizes = [2, 8, 8], strides = [1, 1, 1]} : vector<2x8x96xf32> to vector<2x8x8xf32>
    %9 = vector.extract_strided_slice %4 {offsets = [0, 0, 64], sizes = [2, 8, 8], strides = [1, 1, 1]} : vector<2x8x96xf32> to vector<2x8x8xf32>
    "tpu.trace_start"() <{level = 10 : i32, message = "bqd,bkd->bqk"}> : () -> ()
    %cst_8 = arith.constant dense<0.000000e+00> : vector<2x8x8xf32>
    %10 = tpu.matmul %7, %8, %cst_8 {dimension_numbers = #tpu.dot_dimension_numbers<[2], [2], [1], [1], [0, 0, 0, 1, 1, 1], [0], [0]>} : vector<2x8x8xf32>, vector<2x8x8xf32>, vector<2x8x8xf32> -> vector<2x8x8xf32>
    "tpu.trace_stop"() : () -> ()
    %11 = vector.extract_strided_slice %1 {offsets = [0, 0, 0, 0], sizes = [2, 1, 8, 8], strides = [1, 1, 1, 1]} : vector<2x4x8x8xf32> to vector<2x1x8x8xf32>
    %12 = vector.shape_cast %11 : vector<2x1x8x8xf32> to vector<2x8x8xf32>
    %13 = arith.addf %10, %12 : vector<2x8x8xf32>
    %cst_9 = arith.constant dense<0xFF800000> : vector<2x8xf32>
    %14 = vector.multi_reduction <maximumf>, %13, %cst_9 [2] : vector<2x8x8xf32> to vector<2x8xf32>
    %15 = vector.shape_cast %14 : vector<2x8xf32> to vector<2x8x1xf32>
    %16 = vector.broadcast %15 : vector<2x8x1xf32> to vector<2x8x8xf32>
    %17 = arith.subf %13, %16 : vector<2x8x8xf32>
    %18 = math.exp %17 : vector<2x8x8xf32>
    %cst_10 = arith.constant dense<0.000000e+00> : vector<2x8xf32>
    %19 = vector.multi_reduction <add>, %18, %cst_10 [2] : vector<2x8x8xf32> to vector<2x8xf32>
    %20 = vector.shape_cast %19 : vector<2x8xf32> to vector<2x8x1xf32>
    %21 = vector.broadcast %20 : vector<2x8x1xf32> to vector<2x8x8xf32>
    %22 = arith.divf %18, %21 : vector<2x8x8xf32>
    "tpu.trace_start"() <{level = 10 : i32, message = "bqk,bkd->bqd"}> : () -> ()
    %cst_11 = arith.constant dense<0.000000e+00> : vector<2x8x8xf32>
    %23 = tpu.matmul %22, %9, %cst_11 {dimension_numbers = #tpu.dot_dimension_numbers<[2], [1], [1], [2], [0, 0, 0, 1, 1, 2], [0], [0]>} : vector<2x8x8xf32>, vector<2x8x8xf32>, vector<2x8x8xf32> -> vector<2x8x8xf32>
    "tpu.trace_stop"() : () -> ()
    %24 = vector.extract_strided_slice %22 {offsets = [0, 0, 0], sizes = [2, 1, 8], strides = [1, 1, 1]} : vector<2x8x8xf32> to vector<2x1x8xf32>
    %25 = vector.shape_cast %24 : vector<2x1x8xf32> to vector<2x8xf32>
    %26 = vector.extract_strided_slice %22 {offsets = [0, 1, 0], sizes = [2, 1, 8], strides = [1, 1, 1]} : vector<2x8x8xf32> to vector<2x1x8xf32>
    %27 = vector.shape_cast %26 : vector<2x1x8xf32> to vector<2x8xf32>
    %28 = vector.extract_strided_slice %22 {offsets = [0, 2, 0], sizes = [2, 1, 8], strides = [1, 1, 1]} : vector<2x8x8xf32> to vector<2x1x8xf32>
    %29 = vector.shape_cast %28 : vector<2x1x8xf32> to vector<2x8xf32>
    %30 = vector.extract_strided_slice %22 {offsets = [0, 3, 0], sizes = [2, 1, 8], strides = [1, 1, 1]} : vector<2x8x8xf32> to vector<2x1x8xf32>
    %31 = vector.shape_cast %30 : vector<2x1x8xf32> to vector<2x8xf32>
    %32 = vector.extract_strided_slice %22 {offsets = [0, 4, 0], sizes = [2, 1, 8], strides = [1, 1, 1]} : vector<2x8x8xf32> to vector<2x1x8xf32>
    %33 = vector.shape_cast %32 : vector<2x1x8xf32> to vector<2x8xf32>
    %34 = vector.extract_strided_slice %22 {offsets = [0, 5, 0], sizes = [2, 1, 8], strides = [1, 1, 1]} : vector<2x8x8xf32> to vector<2x1x8xf32>
    %35 = vector.shape_cast %34 : vector<2x1x8xf32> to vector<2x8xf32>
    %36 = vector.extract_strided_slice %22 {offsets = [0, 6, 0], sizes = [2, 1, 8], strides = [1, 1, 1]} : vector<2x8x8xf32> to vector<2x1x8xf32>
    %37 = vector.shape_cast %36 : vector<2x1x8xf32> to vector<2x8xf32>
    %38 = vector.extract_strided_slice %22 {offsets = [0, 7, 0], sizes = [2, 1, 8], strides = [1, 1, 1]} : vector<2x8x8xf32> to vector<2x1x8xf32>
    %39 = vector.shape_cast %38 : vector<2x1x8xf32> to vector<2x8xf32>
    %40 = vector.extract_strided_slice %4 {offsets = [0, 0, 8], sizes = [2, 8, 8], strides = [1, 1, 1]} : vector<2x8x96xf32> to vector<2x8x8xf32>
    %cst_12 = arith.constant 0.353553385 : f32
    %41 = vector.broadcast %cst_12 : f32 to vector<2x8x8xf32>
    %42 = arith.mulf %40, %41 : vector<2x8x8xf32>
    %43 = vector.extract_strided_slice %4 {offsets = [0, 0, 40], sizes = [2, 8, 8], strides = [1, 1, 1]} : vector<2x8x96xf32> to vector<2x8x8xf32>
    %44 = vector.extract_strided_slice %4 {offsets = [0, 0, 72], sizes = [2, 8, 8], strides = [1, 1, 1]} : vector<2x8x96xf32> to vector<2x8x8xf32>
    "tpu.trace_start"() <{level = 10 : i32, message = "bqd,bkd->bqk"}> : () -> ()
    %cst_13 = arith.constant dense<0.000000e+00> : vector<2x8x8xf32>
    %45 = tpu.matmul %42, %43, %cst_13 {dimension_numbers = #tpu.dot_dimension_numbers<[2], [2], [1], [1], [0, 0, 0, 1, 1, 1], [0], [0]>} : vector<2x8x8xf32>, vector<2x8x8xf32>, vector<2x8x8xf32> -> vector<2x8x8xf32>
    "tpu.trace_stop"() : () -> ()
    %46 = vector.extract_strided_slice %1 {offsets = [0, 1, 0, 0], sizes = [2, 1, 8, 8], strides = [1, 1, 1, 1]} : vector<2x4x8x8xf32> to vector<2x1x8x8xf32>
    %47 = vector.shape_cast %46 : vector<2x1x8x8xf32> to vector<2x8x8xf32>
    %48 = arith.addf %45, %47 : vector<2x8x8xf32>
    %cst_14 = arith.constant dense<0xFF800000> : vector<2x8xf32>
    %49 = vector.multi_reduction <maximumf>, %48, %cst_14 [2] : vector<2x8x8xf32> to vector<2x8xf32>
    %50 = vector.shape_cast %49 : vector<2x8xf32> to vector<2x8x1xf32>
    %51 = vector.broadcast %50 : vector<2x8x1xf32> to vector<2x8x8xf32>
    %52 = arith.subf %48, %51 : vector<2x8x8xf32>
    %53 = math.exp %52 : vector<2x8x8xf32>
    %cst_15 = arith.constant dense<0.000000e+00> : vector<2x8xf32>
    %54 = vector.multi_reduction <add>, %53, %cst_15 [2] : vector<2x8x8xf32> to vector<2x8xf32>
    %55 = vector.shape_cast %54 : vector<2x8xf32> to vector<2x8x1xf32>
    %56 = vector.broadcast %55 : vector<2x8x1xf32> to vector<2x8x8xf32>
    %57 = arith.divf %53, %56 : vector<2x8x8xf32>
    "tpu.trace_start"() <{level = 10 : i32, message = "bqk,bkd->bqd"}> : () -> ()
    %cst_16 = arith.constant dense<0.000000e+00> : vector<2x8x8xf32>
    %58 = tpu.matmul %57, %44, %cst_16 {dimension_numbers = #tpu.dot_dimension_numbers<[2], [1], [1], [2], [0, 0, 0, 1, 1, 2], [0], [0]>} : vector<2x8x8xf32>, vector<2x8x8xf32>, vector<2x8x8xf32> -> vector<2x8x8xf32>
    "tpu.trace_stop"() : () -> ()
    %59 = vector.extract_strided_slice %57 {offsets = [0, 0, 0], sizes = [2, 1, 8], strides = [1, 1, 1]} : vector<2x8x8xf32> to vector<2x1x8xf32>
    %60 = vector.shape_cast %59 : vector<2x1x8xf32> to vector<2x8xf32>
    %61 = vector.extract_strided_slice %57 {offsets = [0, 1, 0], sizes = [2, 1, 8], strides = [1, 1, 1]} : vector<2x8x8xf32> to vector<2x1x8xf32>
    %62 = vector.shape_cast %61 : vector<2x1x8xf32> to vector<2x8xf32>
    %63 = vector.extract_strided_slice %57 {offsets = [0, 2, 0], sizes = [2, 1, 8], strides = [1, 1, 1]} : vector<2x8x8xf32> to vector<2x1x8xf32>
    %64 = vector.shape_cast %63 : vector<2x1x8xf32> to vector<2x8xf32>
    %65 = vector.extract_strided_slice %57 {offsets = [0, 3, 0], sizes = [2, 1, 8], strides = [1, 1, 1]} : vector<2x8x8xf32> to vector<2x1x8xf32>
    %66 = vector.shape_cast %65 : vector<2x1x8xf32> to vector<2x8xf32>
    %67 = vector.extract_strided_slice %57 {offsets = [0, 4, 0], sizes = [2, 1, 8], strides = [1, 1, 1]} : vector<2x8x8xf32> to vector<2x1x8xf32>
    %68 = vector.shape_cast %67 : vector<2x1x8xf32> to vector<2x8xf32>
    %69 = vector.extract_strided_slice %57 {offsets = [0, 5, 0], sizes = [2, 1, 8], strides = [1, 1, 1]} : vector<2x8x8xf32> to vector<2x1x8xf32>
    %70 = vector.shape_cast %69 : vector<2x1x8xf32> to vector<2x8xf32>
    %71 = vector.extract_strided_slice %57 {offsets = [0, 6, 0], sizes = [2, 1, 8], strides = [1, 1, 1]} : vector<2x8x8xf32> to vector<2x1x8xf32>
    %72 = vector.shape_cast %71 : vector<2x1x8xf32> to vector<2x8xf32>
    %73 = vector.extract_strided_slice %57 {offsets = [0, 7, 0], sizes = [2, 1, 8], strides = [1, 1, 1]} : vector<2x8x8xf32> to vector<2x1x8xf32>
    %74 = vector.shape_cast %73 : vector<2x1x8xf32> to vector<2x8xf32>
    %75 = vector.extract_strided_slice %4 {offsets = [0, 0, 16], sizes = [2, 8, 8], strides = [1, 1, 1]} : vector<2x8x96xf32> to vector<2x8x8xf32>
    %cst_17 = arith.constant 0.353553385 : f32
    %76 = vector.broadcast %cst_17 : f32 to vector<2x8x8xf32>
    %77 = arith.mulf %75, %76 : vector<2x8x8xf32>
    %78 = vector.extract_strided_slice %4 {offsets = [0, 0, 48], sizes = [2, 8, 8], strides = [1, 1, 1]} : vector<2x8x96xf32> to vector<2x8x8xf32>
    %79 = vector.extract_strided_slice %4 {offsets = [0, 0, 80], sizes = [2, 8, 8], strides = [1, 1, 1]} : vector<2x8x96xf32> to vector<2x8x8xf32>
    "tpu.trace_start"() <{level = 10 : i32, message = "bqd,bkd->bqk"}> : () -> ()
    %cst_18 = arith.constant dense<0.000000e+00> : vector<2x8x8xf32>
    %80 = tpu.matmul %77, %78, %cst_18 {dimension_numbers = #tpu.dot_dimension_numbers<[2], [2], [1], [1], [0, 0, 0, 1, 1, 1], [0], [0]>} : vector<2x8x8xf32>, vector<2x8x8xf32>, vector<2x8x8xf32> -> vector<2x8x8xf32>
    "tpu.trace_stop"() : () -> ()
    %81 = vector.extract_strided_slice %1 {offsets = [0, 2, 0, 0], sizes = [2, 1, 8, 8], strides = [1, 1, 1, 1]} : vector<2x4x8x8xf32> to vector<2x1x8x8xf32>
    %82 = vector.shape_cast %81 : vector<2x1x8x8xf32> to vector<2x8x8xf32>
    %83 = arith.addf %80, %82 : vector<2x8x8xf32>
    %cst_19 = arith.constant dense<0xFF800000> : vector<2x8xf32>
    %84 = vector.multi_reduction <maximumf>, %83, %cst_19 [2] : vector<2x8x8xf32> to vector<2x8xf32>
    %85 = vector.shape_cast %84 : vector<2x8xf32> to vector<2x8x1xf32>
    %86 = vector.broadcast %85 : vector<2x8x1xf32> to vector<2x8x8xf32>
    %87 = arith.subf %83, %86 : vector<2x8x8xf32>
    %88 = math.exp %87 : vector<2x8x8xf32>
    %cst_20 = arith.constant dense<0.000000e+00> : vector<2x8xf32>
    %89 = vector.multi_reduction <add>, %88, %cst_20 [2] : vector<2x8x8xf32> to vector<2x8xf32>
    %90 = vector.shape_cast %89 : vector<2x8xf32> to vector<2x8x1xf32>
    %91 = vector.broadcast %90 : vector<2x8x1xf32> to vector<2x8x8xf32>
    %92 = arith.divf %88, %91 : vector<2x8x8xf32>
    "tpu.trace_start"() <{level = 10 : i32, message = "bqk,bkd->bqd"}> : () -> ()
    %cst_21 = arith.constant dense<0.000000e+00> : vector<2x8x8xf32>
    %93 = tpu.matmul %92, %79, %cst_21 {dimension_numbers = #tpu.dot_dimension_numbers<[2], [1], [1], [2], [0, 0, 0, 1, 1, 2], [0], [0]>} : vector<2x8x8xf32>, vector<2x8x8xf32>, vector<2x8x8xf32> -> vector<2x8x8xf32>
    "tpu.trace_stop"() : () -> ()
    %94 = vector.extract_strided_slice %92 {offsets = [0, 0, 0], sizes = [2, 1, 8], strides = [1, 1, 1]} : vector<2x8x8xf32> to vector<2x1x8xf32>
    %95 = vector.shape_cast %94 : vector<2x1x8xf32> to vector<2x8xf32>
    %96 = vector.extract_strided_slice %92 {offsets = [0, 1, 0], sizes = [2, 1, 8], strides = [1, 1, 1]} : vector<2x8x8xf32> to vector<2x1x8xf32>
    %97 = vector.shape_cast %96 : vector<2x1x8xf32> to vector<2x8xf32>
    %98 = vector.extract_strided_slice %92 {offsets = [0, 2, 0], sizes = [2, 1, 8], strides = [1, 1, 1]} : vector<2x8x8xf32> to vector<2x1x8xf32>
    %99 = vector.shape_cast %98 : vector<2x1x8xf32> to vector<2x8xf32>
    %100 = vector.extract_strided_slice %92 {offsets = [0, 3, 0], sizes = [2, 1, 8], strides = [1, 1, 1]} : vector<2x8x8xf32> to vector<2x1x8xf32>
    %101 = vector.shape_cast %100 : vector<2x1x8xf32> to vector<2x8xf32>
    %102 = vector.extract_strided_slice %92 {offsets = [0, 4, 0], sizes = [2, 1, 8], strides = [1, 1, 1]} : vector<2x8x8xf32> to vector<2x1x8xf32>
    %103 = vector.shape_cast %102 : vector<2x1x8xf32> to vector<2x8xf32>
    %104 = vector.extract_strided_slice %92 {offsets = [0, 5, 0], sizes = [2, 1, 8], strides = [1, 1, 1]} : vector<2x8x8xf32> to vector<2x1x8xf32>
    %105 = vector.shape_cast %104 : vector<2x1x8xf32> to vector<2x8xf32>
    %106 = vector.extract_strided_slice %92 {offsets = [0, 6, 0], sizes = [2, 1, 8], strides = [1, 1, 1]} : vector<2x8x8xf32> to vector<2x1x8xf32>
    %107 = vector.shape_cast %106 : vector<2x1x8xf32> to vector<2x8xf32>
    %108 = vector.extract_strided_slice %92 {offsets = [0, 7, 0], sizes = [2, 1, 8], strides = [1, 1, 1]} : vector<2x8x8xf32> to vector<2x1x8xf32>
    %109 = vector.shape_cast %108 : vector<2x1x8xf32> to vector<2x8xf32>
    %110 = vector.extract_strided_slice %4 {offsets = [0, 0, 24], sizes = [2, 8, 8], strides = [1, 1, 1]} : vector<2x8x96xf32> to vector<2x8x8xf32>
    %cst_22 = arith.constant 0.353553385 : f32
    %111 = vector.broadcast %cst_22 : f32 to vector<2x8x8xf32>
    %112 = arith.mulf %110, %111 : vector<2x8x8xf32>
    %113 = vector.extract_strided_slice %4 {offsets = [0, 0, 56], sizes = [2, 8, 8], strides = [1, 1, 1]} : vector<2x8x96xf32> to vector<2x8x8xf32>
    %114 = vector.extract_strided_slice %4 {offsets = [0, 0, 88], sizes = [2, 8, 8], strides = [1, 1, 1]} : vector<2x8x96xf32> to vector<2x8x8xf32>
    "tpu.trace_start"() <{level = 10 : i32, message = "bqd,bkd->bqk"}> : () -> ()
    %cst_23 = arith.constant dense<0.000000e+00> : vector<2x8x8xf32>
    %115 = tpu.matmul %112, %113, %cst_23 {dimension_numbers = #tpu.dot_dimension_numbers<[2], [2], [1], [1], [0, 0, 0, 1, 1, 1], [0], [0]>} : vector<2x8x8xf32>, vector<2x8x8xf32>, vector<2x8x8xf32> -> vector<2x8x8xf32>
    "tpu.trace_stop"() : () -> ()
    %116 = vector.extract_strided_slice %1 {offsets = [0, 3, 0, 0], sizes = [2, 1, 8, 8], strides = [1, 1, 1, 1]} : vector<2x4x8x8xf32> to vector<2x1x8x8xf32>
    %117 = vector.shape_cast %116 : vector<2x1x8x8xf32> to vector<2x8x8xf32>
    %118 = arith.addf %115, %117 : vector<2x8x8xf32>
    %cst_24 = arith.constant dense<0xFF800000> : vector<2x8xf32>
    %119 = vector.multi_reduction <maximumf>, %118, %cst_24 [2] : vector<2x8x8xf32> to vector<2x8xf32>
    %120 = vector.shape_cast %119 : vector<2x8xf32> to vector<2x8x1xf32>
    %121 = vector.broadcast %120 : vector<2x8x1xf32> to vector<2x8x8xf32>
    %122 = arith.subf %118, %121 : vector<2x8x8xf32>
    %123 = math.exp %122 : vector<2x8x8xf32>
    %cst_25 = arith.constant dense<0.000000e+00> : vector<2x8xf32>
    %124 = vector.multi_reduction <add>, %123, %cst_25 [2] : vector<2x8x8xf32> to vector<2x8xf32>
    %125 = vector.shape_cast %124 : vector<2x8xf32> to vector<2x8x1xf32>
    %126 = vector.broadcast %125 : vector<2x8x1xf32> to vector<2x8x8xf32>
    %127 = arith.divf %123, %126 : vector<2x8x8xf32>
    "tpu.trace_start"() <{level = 10 : i32, message = "bqk,bkd->bqd"}> : () -> ()
    %cst_26 = arith.constant dense<0.000000e+00> : vector<2x8x8xf32>
    %128 = tpu.matmul %127, %114, %cst_26 {dimension_numbers = #tpu.dot_dimension_numbers<[2], [1], [1], [2], [0, 0, 0, 1, 1, 2], [0], [0]>} : vector<2x8x8xf32>, vector<2x8x8xf32>, vector<2x8x8xf32> -> vector<2x8x8xf32>
    "tpu.trace_stop"() : () -> ()
    %129 = vector.extract_strided_slice %127 {offsets = [0, 0, 0], sizes = [2, 1, 8], strides = [1, 1, 1]} : vector<2x8x8xf32> to vector<2x1x8xf32>
    %130 = vector.shape_cast %129 : vector<2x1x8xf32> to vector<2x8xf32>
    %131 = vector.extract_strided_slice %127 {offsets = [0, 1, 0], sizes = [2, 1, 8], strides = [1, 1, 1]} : vector<2x8x8xf32> to vector<2x1x8xf32>
    %132 = vector.shape_cast %131 : vector<2x1x8xf32> to vector<2x8xf32>
    %133 = vector.extract_strided_slice %127 {offsets = [0, 2, 0], sizes = [2, 1, 8], strides = [1, 1, 1]} : vector<2x8x8xf32> to vector<2x1x8xf32>
    %134 = vector.shape_cast %133 : vector<2x1x8xf32> to vector<2x8xf32>
    %135 = vector.extract_strided_slice %127 {offsets = [0, 3, 0], sizes = [2, 1, 8], strides = [1, 1, 1]} : vector<2x8x8xf32> to vector<2x1x8xf32>
    %136 = vector.shape_cast %135 : vector<2x1x8xf32> to vector<2x8xf32>
    %137 = vector.extract_strided_slice %127 {offsets = [0, 4, 0], sizes = [2, 1, 8], strides = [1, 1, 1]} : vector<2x8x8xf32> to vector<2x1x8xf32>
    %138 = vector.shape_cast %137 : vector<2x1x8xf32> to vector<2x8xf32>
    %139 = vector.extract_strided_slice %127 {offsets = [0, 5, 0], sizes = [2, 1, 8], strides = [1, 1, 1]} : vector<2x8x8xf32> to vector<2x1x8xf32>
    %140 = vector.shape_cast %139 : vector<2x1x8xf32> to vector<2x8xf32>
    %141 = vector.extract_strided_slice %127 {offsets = [0, 6, 0], sizes = [2, 1, 8], strides = [1, 1, 1]} : vector<2x8x8xf32> to vector<2x1x8xf32>
    %142 = vector.shape_cast %141 : vector<2x1x8xf32> to vector<2x8xf32>
    %143 = vector.extract_strided_slice %127 {offsets = [0, 7, 0], sizes = [2, 1, 8], strides = [1, 1, 1]} : vector<2x8x8xf32> to vector<2x1x8xf32>
    %144 = vector.shape_cast %143 : vector<2x1x8xf32> to vector<2x8xf32>
    %145 = tpu.concatenate %25, %27, %29, %31, %33, %35, %37, %39, %60, %62, %64, %66, %68, %70, %72, %74 in 1 : vector<2x8xf32>, vector<2x8xf32>, vector<2x8xf32>, vector<2x8xf32>, vector<2x8xf32>, vector<2x8xf32>, vector<2x8xf32>, vector<2x8xf32>, vector<2x8xf32>, vector<2x8xf32>, vector<2x8xf32>, vector<2x8xf32>, vector<2x8xf32>, vector<2x8xf32>, vector<2x8xf32>, vector<2x8xf32> -> vector<2x128xf32>
    %146 = tpu.concatenate %95, %97, %99, %101, %103, %105, %107, %109, %130, %132, %134, %136, %138, %140, %142, %144 in 1 : vector<2x8xf32>, vector<2x8xf32>, vector<2x8xf32>, vector<2x8xf32>, vector<2x8xf32>, vector<2x8xf32>, vector<2x8xf32>, vector<2x8xf32>, vector<2x8xf32>, vector<2x8xf32>, vector<2x8xf32>, vector<2x8xf32>, vector<2x8xf32>, vector<2x8xf32>, vector<2x8xf32>, vector<2x8xf32> -> vector<2x128xf32>
    %147 = tpu.concatenate %145, %146 in 1 : vector<2x128xf32>, vector<2x128xf32> -> vector<2x256xf32>
    %c0_27 = arith.constant 0 : index
    %c0_28 = arith.constant 0 : index
    %148 = vector.load %arg5[%c0_27, %c0_28] : memref<2x256xf32, #tpu.memory_space<vmem>>, vector<2x256xf32>
    tpu.vector_store %arg5[%c0_27, %c0_28], %147 {strides = array<i32>} : memref<2x256xf32, #tpu.memory_space<vmem>>, vector<2x256xf32>,
    %149 = tpu.concatenate %23, %58, %93, %128 in 2 : vector<2x8x8xf32>, vector<2x8x8xf32>, vector<2x8x8xf32>, vector<2x8x8xf32> -> vector<2x8x32xf32>
    %150 = vector.shape_cast %149 : vector<2x8x32xf32> to vector<16x32xf32>
    %c0_29 = arith.constant 0 : index
    %c0_30 = arith.constant 0 : index
    %151 = vector.load %arg3[%c0_29, %c0_30] : memref<32x32xf32, #tpu.memory_space<vmem>>, vector<32x32xf32>
    %cst_31 = arith.constant dense<0.000000e+00> : vector<16x32xf32>
    %152 = tpu.matmul %150, %151, %cst_31 {dimension_numbers = #tpu.dot_dimension_numbers<[1], [0], [0], [1], [0, 0, 1, 1], [], []>} : vector<16x32xf32>, vector<32x32xf32>, vector<16x32xf32> -> vector<16x32xf32>
    %153 = vector.shape_cast %152 : vector<16x32xf32> to vector<2x8x32xf32>
    %154 = vector.extract_strided_slice %153 {offsets = [0, 0, 0], sizes = [2, 1, 32], strides = [1, 1, 1]} : vector<2x8x32xf32> to vector<2x1x32xf32>
    %155 = vector.shape_cast %154 : vector<2x1x32xf32> to vector<2x32xf32>
    %156 = vector.extract_strided_slice %153 {offsets = [0, 1, 0], sizes = [2, 1, 32], strides = [1, 1, 1]} : vector<2x8x32xf32> to vector<2x1x32xf32>
    %157 = vector.shape_cast %156 : vector<2x1x32xf32> to vector<2x32xf32>
    %158 = vector.extract_strided_slice %153 {offsets = [0, 2, 0], sizes = [2, 1, 32], strides = [1, 1, 1]} : vector<2x8x32xf32> to vector<2x1x32xf32>
    %159 = vector.shape_cast %158 : vector<2x1x32xf32> to vector<2x32xf32>
    %160 = vector.extract_strided_slice %153 {offsets = [0, 3, 0], sizes = [2, 1, 32], strides = [1, 1, 1]} : vector<2x8x32xf32> to vector<2x1x32xf32>
    %161 = vector.shape_cast %160 : vector<2x1x32xf32> to vector<2x32xf32>
    %162 = vector.extract_strided_slice %153 {offsets = [0, 4, 0], sizes = [2, 1, 32], strides = [1, 1, 1]} : vector<2x8x32xf32> to vector<2x1x32xf32>
    %163 = vector.shape_cast %162 : vector<2x1x32xf32> to vector<2x32xf32>
    %164 = vector.extract_strided_slice %153 {offsets = [0, 5, 0], sizes = [2, 1, 32], strides = [1, 1, 1]} : vector<2x8x32xf32> to vector<2x1x32xf32>
    %165 = vector.shape_cast %164 : vector<2x1x32xf32> to vector<2x32xf32>
    %166 = vector.extract_strided_slice %153 {offsets = [0, 6, 0], sizes = [2, 1, 32], strides = [1, 1, 1]} : vector<2x8x32xf32> to vector<2x1x32xf32>
    %167 = vector.shape_cast %166 : vector<2x1x32xf32> to vector<2x32xf32>
    %168 = vector.extract_strided_slice %153 {offsets = [0, 7, 0], sizes = [2, 1, 32], strides = [1, 1, 1]} : vector<2x8x32xf32> to vector<2x1x32xf32>
    %169 = vector.shape_cast %168 : vector<2x1x32xf32> to vector<2x32xf32>
    %170 = tpu.concatenate %155, %157, %159, %161, %163, %165, %167, %169 in 1 : vector<2x32xf32>, vector<2x32xf32>, vector<2x32xf32>, vector<2x32xf32>, vector<2x32xf32>, vector<2x32xf32>, vector<2x32xf32>, vector<2x32xf32> -> vector<2x256xf32>
    %c0_32 = arith.constant 0 : index
    %c0_33 = arith.constant 0 : index
    %171 = vector.load %arg4[%c0_32, %c0_33] : memref<2x256xf32, #tpu.memory_space<vmem>>, vector<2x256xf32>
    tpu.vector_store %arg4[%c0_32, %c0_33], %170 {strides = array<i32>} : memref<2x256xf32, #tpu.memory_space<vmem>>, vector<2x256xf32>,
    return
  }
}

</mosaic_0001>

<bundles_post_ra>
// kernel: tpu_custom_call.1
= control target key start
LH: loop header
LB: loop body
LE: loop exit
PB: predicated region body
PF: predicated region fallthrough
CT: control target
= control target key end

     0   :  { %11 = vsyncpa [#allocation3], 0  ;;  %s2815_s0 = inlined_call_operand.hbm [shape: f32[16,32], index: 0, kind: input, shape index: {}]   ;;  %s2816_s1 = inlined_call_operand.hbm [shape: f32[2,4,8,8], index: 1, kind: input, shape index: {}]   ;;  %s2817_s2 = inlined_call_operand.hbm [shape: f32[32,96], index: 2, kind: input, shape index: {}]   ;;  %s2818_s3 = inlined_call_operand.hbm [shape: f32[32,32], index: 3, kind: input, shape index: {}]   ;;  %s2819_s4 = inlined_call_operand.hbm [shape: f32[2,256], index: 4, kind: output, shape index: {0}]   ;;  %s2820_s5 = inlined_call_operand.hbm [shape: f32[2,256], index: 5, kind: output, shape index: {1}]  }
   0x1   :  { %12 = vsyncpa [#allocation6], 0 }
   0x2   :  { %13 = vsyncpa [#allocation9], 0 }
   0x3   :  { %14 = vsyncpa [#allocation4], 0 }
   0x4   :  { %15 = vsyncpa [#allocation12], 0  ;;  %s2329_s18 = smov [#allocation5]   ;;  %s2330_s20 = smov [#allocation2]  }
   0x5   :  { %s33_s19 = sshll.u32 %s2329_s18, 4  ;;  %s21_s21 = sshll.u32 %s2330_s20, 4  ;;  %s34_s19 = int_to_ptr.vmem [resolvable:$true] %s33_s19  ;;  %s2383_s21 = int_to_ptr.vmem [resolvable:$true] %s21_s21 }
   0x6   :  { %s2187_s24 = scalar_lea.hbm %s2816_s1, 1024 }
   0x7   :  { %p2188_p0 = scmp.ne.s32.totalorder %s2816_s1, %s2187_s24  ;;  %p2191_p1 = scmp.lt.u32.totalorder %s2187_s24, %s2816_s1 }
   0x9   :  { %p2193_p2 = pnand %p2191_p1, %p2188_p0 }
   0xb   :  { %2196 = shalt.err (!%p2193_p2)
}
   0xc   :  { %s2197_s29 = scalar_lea.vmem %s34_s19, 1024  ;;  %p2202_p4 = scmp.lt.s32.totalorder %s34_s19, %s34_s19 }
   0xd   :  { %p2198_p3 = scmp.ne.s32.totalorder %s34_s19, %s2197_s29  ;;  %p2203_p5 = scmp.lt.s32.totalorder %s2197_s29, %s2197_s29 }
   0xf   :  { %p2204_p6 = por %p2203_p5, %p2202_p4 }
  0x11   :  { %p2205_p7 = pnand %p2204_p6, %p2198_p3 }
  0x13   :  { %2208 = shalt.err (!%p2205_p7)
}
  0x14   :  { %s2331_s30 = smov 128   ;;  %s2332_s6 = smov 8  }
  0x15   :  { %39 = dma.hbm_to_vmem [thread:$0]  %s2816_s1, 1024, %s34_s19, [#allocation6], %s2331_s30, %s2331_s30, %s2332_s6  }
  0x16   :  { %s2209_s11 = scalar_lea.hbm %s2815_s0, 256 }
  0x17   :  { %p2210_p8 = scmp.ne.s32.totalorder %s2815_s0, %s2209_s11  ;;  %p2213_p9 = scmp.lt.u32.totalorder %s2209_s11, %s2815_s0 }
  0x19   :  { %p2215_p10 = pnand %p2213_p9, %p2210_p8 }
  0x1b   :  { %2218 = shalt.err (!%p2215_p10)
}
  0x1c   :  { %s2219_s16 = scalar_lea.vmem %s2383_s21, 256  ;;  %p2224_p12 = scmp.lt.s32.totalorder %s2383_s21, %s2383_s21 }
  0x1d   :  { %p2220_p11 = scmp.ne.s32.totalorder %s2383_s21, %s2219_s16  ;;  %p2225_p13 = scmp.lt.s32.totalorder %s2219_s16, %s2219_s16 }
  0x1f   :  { %p2226_p0 = por %p2225_p13, %p2224_p12 }
  0x21   :  { %p2227_p1 = pnand %p2226_p0, %p2220_p11 }
  0x23   :  { %2230 = shalt.err (!%p2227_p1)
}
  0x24   :  { %27 = dma.hbm_to_vmem [thread:$0]  %s2815_s0, 256, %s2383_s21, [#allocation3], %s2331_s30, %s2331_s30, %s2332_s6  }
  0x25   :  { %s2333_s18 = smov [#allocation7]   ;;  %s2334_s20 = smov [#allocation8]  }
  0x26   :  { %s45_s19 = sshll.u32 %s2333_s18, 4  ;;  %s57_s22 = sshll.u32 %s2334_s20, 4  ;;  %s46_s19 = int_to_ptr.vmem [resolvable:$true] %s45_s19  ;;  %s2420_s22 = int_to_ptr.vmem [resolvable:$true] %s57_s22 }
  0x27   :  { %s2231_s25 = scalar_lea.hbm %s2817_s2, 512 }
  0x28   :  { %p2232_p2 = scmp.ne.s32.totalorder %s2817_s2, %s2231_s25  ;;  %p2235_p3 = scmp.lt.u32.totalorder %s2231_s25, %s2817_s2 }
  0x2a   :  { %p2237_p4 = pnand %p2235_p3, %p2232_p2 }
  0x2c   :  { %2240 = shalt.err (!%p2237_p4)
}
  0x2d   :  { %s2241_s0 = scalar_lea.vmem %s46_s19, 512  ;;  %p2246_p6 = scmp.lt.s32.totalorder %s46_s19, %s46_s19 }
  0x2e   :  { %p2242_p5 = scmp.ne.s32.totalorder %s46_s19, %s2241_s0  ;;  %p2247_p7 = scmp.lt.s32.totalorder %s2241_s0, %s2241_s0 }
  0x30   :  { %p2248_p8 = por %p2247_p7, %p2246_p6 }
  0x32   :  { %p2249_p9 = pnand %p2248_p8, %p2242_p5 }
  0x34   :  { %2252 = shalt.err (!%p2249_p9)
}
  0x35   :  { %51 = dma.hbm_to_vmem [thread:$0]  %s2817_s2, 512, %s46_s19, [#allocation6], %s2331_s30, %s2331_s30, %s2332_s6  }
  0x36   :  { %s2253_s10 = scalar_lea.hbm %s2818_s3, 512 }
  0x37   :  { %p2254_p10 = scmp.ne.s32.totalorder %s2818_s3, %s2253_s10  ;;  %p2257_p11 = scmp.lt.u32.totalorder %s2253_s10, %s2818_s3 }
  0x39   :  { %p2259_p12 = pnand %p2257_p11, %p2254_p10 }
  0x3b   :  { %2262 = shalt.err (!%p2259_p12)
}
  0x3c   :  { %s2263_s15 = scalar_lea.vmem %s2420_s22, 512  ;;  %p2268_p0 = scmp.lt.s32.totalorder %s2420_s22, %s2420_s22 }
  0x3d   :  { %p2264_p13 = scmp.ne.s32.totalorder %s2420_s22, %s2263_s15  ;;  %p2269_p1 = scmp.lt.s32.totalorder %s2263_s15, %s2263_s15 }
  0x3f   :  { %p2270_p2 = por %p2269_p1, %p2268_p0 }
  0x41   :  { %p2271_p3 = pnand %p2270_p2, %p2264_p13 }
  0x43   :  { %2274 = shalt.err (!%p2271_p3)
}
  0x44   :  { %63 = dma.hbm_to_vmem [thread:$0]  %s2818_s3, 512, %s2420_s22, [#allocation9], %s2331_s30, %s2331_s30, %s2332_s6  }
  0x45   :  { %2319 = dma.done.wait [#allocation3], 256  }
  0x46   :  { %2320 = vsyncadd [#allocation3], 4294967040 }
  0x47   :  { %2321 = dma.done.wait [#allocation6], 1536  }
  0x48   :  { %2322 = vsyncadd [#allocation6], 4294965760 }
  0x49   :  { %2323 = dma.done.wait [#allocation9], 512  }
  0x4a   :  { %2324 = vsyncadd [#allocation9], 4294966784  ;;  %vm90_vm0 = vcmask 261120   ;;  %v86_v0 = vld [vmem:[#allocation7] sm:$0xff]  ;;  %v87_v1 = vld [vmem:[#allocation7 + $0x8] sm:$0xff]  ;;  %v2335_v8 = vmov 0.0  }
  0x4b   :  { %v88_v2 = vld [vmem:[#allocation7 + $0x10] sm:$0xff]  ;;  %v2115_v3 = vpack.c.bf16 %v87_v1, %v86_v0  ;;  %v89_v4 = vld [vmem:[#allocation7 + $0x18] sm:$0xff]  ;;  %2024 = vmatprep.subr.mxu1 %v2335_v8  ;;  %vm2336_vm1 = vmmov 0   ;;  %s2337_s3 = smov 96   ;;  %vm177_vm2 = vcmask 64512   ;;  %v78_v15 = vld [vmem:[#allocation5] sm:$0xff] }
  0x4c   :  { %v76_v5 = vld [vmem:[#allocation2] sm:$0xff]  ;;  %v2119_v6 = vpack.c.bf16 %v89_v4, %v88_v2  ;;  %v77_v7 = vld [vmem:[#allocation2 + $0x8] sm:$0xff]  ;;  %2026 = vmatprep.mubr.msk.f32.mxu1 %vm2336_vm1, %v2335_v8  ;;  %v82_v19 = vld [vmem:[#allocation5 + $0x20] sm:$0xff]  ;;  %s2338_s30 = smov 64   ;;  %s2339_s1 = smov 88   ;;  %vm1496_vm3 = vcmask 1041409  }
  0x4d   :  { %2021 = vmatprep.mubr.msk.f32.mxu0 %vm90_vm0, %v76_v5  ;;  %2116 = vmatprep.subr.bf16.mxu0 %v2115_v3  ;;  %s2340_s17 = smov 120   ;;  %v79_v5 = vld [vmem:[#allocation5 + $0x8] sm:$0xff]  ;;  %s2341_s18 = smov 56   ;;  %vm1589_vm4 = vcmask 195584   ;;  %vm1587_vm5 = vcmask 130048   ;;  %vm1592_vm6 = vcmask 326656  }
  0x4e   :  { %2118 = vmatpush3.bf16.msra.mxu0 %v2115_v3  ;;  %s2342_s19 = smov 112   ;;  %s2343_s20 = smov 80   ;;  %vm1594_vm7 = vcmask 392192   ;;  %vm1596_vm8 = vcmask 457728   ;;  %vm1598_vm9 = vcmask 523264   ;;  %vm1600_vm10 = vcmask 588800  }
  0x4f   :  { %2120 = vmatprep.subr.bf16.mxu0 %v2119_v6  ;;  %s2344_s22 = smov 48   ;;  %s2345_s23 = smov 72   ;;  %vm1602_vm11 = vcmask 654336   ;;  %vm1604_vm12 = vcmask 719872   ;;  %vm1606_vm13 = vcmask 785408   ;;  %vm1608_vm14 = vcmask 850944  }
  0x50   :  { %s2346_s24 = smov 104   ;;  %s2347_s25 = smov 40   ;;  %vm1610_vm15 = vcmask 916480  }
  0x51   :  { %s2348_s26 = smov 16   ;;  %s2349_s27 = smov 24  }
  0x52   :  { %2122 = vmatpush3.bf16.msra.mxu0 %v2119_v6  ;;  %s2350_s28 = smov 32  }
  0x53   :  { %2044 = vmatprep.subr.mxu0 %v2335_v8 }
  0x55   :  { %2022 = vmatmul.mubr.msk.f32.vlgmr.msra.gmra.mrb[0].mxu0 %vm90_vm0, %v77_v7 }
  0x56   :  { %2046 = vmatprep.mubr.msk.f32.mxu0 %vm2336_vm1, %v2335_v8 }
 0x128   :  { %v2465_v9 = vpop.f32.mrb[0].mxu0 }
 0x129   :  { %v2467_v10 = vpop.f32.mrb[1].mxu0  ;;  %v2484_v14 = vmul.f32 0.35355338, %v2465_v9 }
 0x12a   :  { %175 = vrot.lane.b32.xlu0 %v2467_v10, %s2337_s3  ;;  %v2476_v12 = vmul.f32 0.35355338, %v2467_v10 }
 0x12e   :  { %254 = vrot.lane.b32.xlu0 %v2465_v9, %s2337_s3 }
 0x19c   :  { %v176_v11 = vpop.permute.xlu0 %175 }
 0x19d   :  { %2025 = vmatpush3.xpose.msk.msra.mxu1 %vm177_vm2, %v176_v11 }
 0x19e   :  { %2029 = vmatprep.subr.mxu1 %v2335_v8 }
 0x1a0   :  { %v255_v13 = vpop.permute.xlu0 %254  ;;  %2027 = vmatmul.mubr.msk.f32.vlgmr.msra.gmra.mrb[0].mxu1 %vm177_vm2, %v2476_v12 }
 0x1a1   :  { %2030 = vmatpush3.xpose.msk.msra.mxu1 %vm177_vm2, %v255_v13  ;;  %2031 = vmatprep.mubr.msk.f32.mxu1 %vm2336_vm1, %v2335_v8 }
 0x1a2   :  { %2034 = vmatprep.subr.mxu1 %v2335_v8 }
 0x1a4   :  { %2032 = vmatmul.mubr.msk.f32.vlgmr.msra.gmra.mrb[2].mxu1 %vm177_vm2, %v2484_v14 }
 0x1a5   :  { %2036 = vmatprep.mubr.msk.f32.mxu1 %vm2336_vm1, %v2335_v8 }
 0x273   :  { %v249_v16 = vpop.f32.mrb[0].mxu1 }
 0x274   :  { %v250_v17 = vadd.f32 %v249_v16, %v78_v15  ;;  %v2028_v18 = vpop.f32.mrb[1].mxu1 }
 0x276   :  { %v331_v20 = vsel %vm177_vm2, %v250_v17, -inf }
 0x277   :  { %332 = vmax.xlane.f32.xlu1 %v331_v20  ;;  %v327_v21 = vpop.f32.mrb[2].mxu1 }
 0x278   :  { %v328_v22 = vadd.f32 %v327_v21, %v82_v19  ;;  %v2033_v23 = vpop.f32.mrb[3].mxu1  ;;  %v83_v19 = vld [vmem:[#allocation5 + $0x28] sm:$0xff] }
 0x27a   :  { %v334_v24 = vsel %vm177_vm2, %v328_v22, -inf }
 0x27b   :  { %335 = vmax.xlane.f32.xlu1 %v334_v24 }
 0x28c   :  { %353 = vrot.lane.b32.xlu1 %v2467_v10, %s2338_s30 }
 0x290   :  { %429 = vrot.lane.b32.xlu1 %v2465_v9, %s2338_s30 }
 0x294   :  { %507 = vrot.lane.b32.xlu1 %v2467_v10, %s2339_s1 }
 0x298   :  { %585 = vrot.lane.b32.xlu1 %v2465_v9, %s2339_s1 }
 0x304   :  { %v333_v25 = vpop.xlane.xlu1 %332 }
 0x305   :  { %v337_v26 = vsub.f32 %v250_v17, %v333_v25 }
 0x307   :  { %v339_v27 = vmul.f32 1.442695, %v337_v26 }
 0x308   :  { %v336_v28 = vpop.xlane.xlu1 %335 }
 0x309   :  { %2155 = vpow2.f32 %v339_v27  ;;  %v338_v29 = vsub.f32 %v328_v22, %v336_v28 }
 0x30b   :  { %v341_v30 = vmul.f32 1.442695, %v338_v29 }
 0x30c   :  { %v354_v31 = vpop.permute.xlu1 %353 }
 0x30d   :  { %2157 = vpow2.f32 %v341_v30  ;;  %2035 = vmatpush3.msra.mxu1 %v354_v31 }
 0x30e   :  { %2039 = vmatprep.subr.mxu1 %v2335_v8 }
 0x310   :  { %v430_v32 = vpop.permute.xlu1 %429 }
 0x313   :  { %v2156_v33 = vpop.eup %2155 }
 0x314   :  { %v508_v34 = vpop.permute.xlu1 %507  ;;  %v343_v35 = vsel %vm177_vm2, %v2156_v33, 0.0 }
 0x315   :  { %344 = vadd.xlane.f32.xlu0 %v343_v35  ;;  %2045 = vmatpush3.xpose.msk.msra.mxu0 %vm177_vm2, %v508_v34 }
 0x316   :  { %2054 = vmatprep.subr.mxu0 %v2335_v8 }
 0x317   :  { %v2158_v36 = vpop.eup %2157 }
 0x318   :  { %v346_v37 = vsel %vm177_vm2, %v2158_v36, 0.0  ;;  %v586_v38 = vpop.permute.xlu1 %585 }
 0x319   :  { %347 = vadd.xlane.f32.xlu1 %v346_v37 }
 0x32a   :  { %583 = vrot.lane.b32.xlu1 %v2484_v14, %s2340_s17 }
 0x32b   :  { %505 = vrot.lane.b32.xlu0 %v2476_v12, %s2340_s17 }
 0x3a2   :  { %v345_v39 = vpop.xlane.xlu0 %344 }
 0x3a3   :  { %2159 = vrcp.f32 %v345_v39 }
 0x3a6   :  { %v506_v40 = vpop.permute.xlu0 %505  ;;  %v348_v41 = vpop.xlane.xlu1 %347 }
 0x3a7   :  { %2161 = vrcp.f32 %v348_v41  ;;  %2047 = vmatmul.mubr.msk.f32.vlgmr.msra.gmra.mrb[2].mxu0 %vm177_vm2, %v506_v40 }
 0x3a8   :  { %2056 = vmatprep.mubr.msk.f32.mxu0 %vm2336_vm1, %v2335_v8 }
 0x3aa   :  { %v584_v4 = vpop.permute.xlu1 %583 }
 0x3ad   :  { %v2160_v42 = vpop.eup %2159 }
 0x3ae   :  { %v350_v43 = vmul.f32 %v2160_v42, %v2156_v33 }
 0x3b0   :  { %2037 = vmatmul.mubr.msk.f32.vlgmr.msra.gmra.mrb[4].mxu1 %vm177_vm2, %v350_v43  ;;  %v1499_v46 = vrot.slane %v350_v43, 1  ;;  %v1504_v47 = vrot.slane %v350_v43, 2  ;;  %v1510_v48 = vrot.slane %v350_v43, 3  ;;  %v1516_v49 = vrot.slane %v350_v43, 4 }
 0x3b1   :  { %v2162_v44 = vpop.eup %2161  ;;  %2040 = vmatpush3.msra.mxu1 %v430_v32  ;;  %2041 = vmatprep.mubr.msk.f32.mxu1 %vm2336_vm1, %v2335_v8  ;;  %v1522_v50 = vrot.slane %v350_v43, 5  ;;  %v1528_v51 = vrot.slane %v350_v43, 6  ;;  %v1534_v52 = vrot.slane %v350_v43, 7 }
 0x3b2   :  { %v352_v45 = vmul.f32 %v2162_v44, %v2158_v36  ;;  %2049 = vmatprep.subr.mxu1 %v2335_v8 }
 0x3b4   :  { %2042 = vmatmul.mubr.msk.f32.vlgmr.msra.gmra.mrb[6].mxu1 %vm177_vm2, %v352_v45  ;;  %v2519_v53 = vsel %vm1496_vm3, %v352_v45, %v1499_v46  ;;  %v1505_v54 = vrot.slane %v352_v45, 1  ;;  %v1511_v55 = vrot.slane %v352_v45, 2  ;;  %v1517_v56 = vrot.slane %v352_v45, 3 }
 0x3b5   :  { %2051 = vmatprep.mubr.msk.f32.mxu1 %vm2336_vm1, %v2335_v8  ;;  %v1523_v57 = vrot.slane %v352_v45, 4  ;;  %v1529_v58 = vrot.slane %v352_v45, 5  ;;  %v1535_v59 = vrot.slane %v352_v45, 6  ;;  %v1495_v60 = vrot.slane %v352_v45, 7 }
 0x3b6   :  { %v2524_v61 = vsel %vm1496_vm3, %v1505_v54, %v1504_v47  ;;  %v2527_v62 = vsel %vm1496_vm3, %v1511_v55, %v1510_v48  ;;  %v2530_v63 = vsel %vm1496_vm3, %v1517_v56, %v1516_v49 }
 0x3b7   :  { %v2533_v0 = vsel %vm1496_vm3, %v1523_v57, %v1522_v50  ;;  %v2536_v1 = vsel %vm1496_vm3, %v1529_v58, %v1528_v51  ;;  %v2539_v2 = vsel %vm1496_vm3, %v1535_v59, %v1534_v52  ;;  %v2542_v3 = vsel %vm1496_vm3, %v1495_v60, %v350_v43 }
 0x3b8   :  { %2050 = vmatpush3.xpose.msk.msra.mxu1 %vm177_vm2, %v586_v38 }
 0x3b9   :  { %2059 = vmatprep.subr.mxu1 %v2335_v8 }
 0x3bb   :  { %2052 = vmatmul.mubr.msk.f32.vlgmr.msra.gmra.mrb[8].mxu1 %vm177_vm2, %v584_v4 }
 0x3bc   :  { %2061 = vmatprep.mubr.msk.f32.mxu1 %vm2336_vm1, %v2335_v8 }
 0x47a   :  { %v579_v6 = vpop.f32.mrb[2].mxu0 }
 0x47b   :  { %v580_v7 = vadd.f32 %v579_v6, %v79_v5  ;;  %v2048_v11 = vpop.f32.mrb[3].mxu0 }
 0x47d   :  { %v661_v13 = vsel %vm177_vm2, %v580_v7, -inf }
 0x47e   :  { %662 = vmax.xlane.f32.xlu1 %v661_v13 }
 0x483   :  { %v2550_v15 = vpop.f32.mrb[4].mxu1 }
 0x484   :  { %v2038_v16 = vpop.f32.mrb[5].mxu1 }
 0x487   :  { %v2552_v17 = vpop.f32.mrb[6].mxu1 }
 0x488   :  { %v2043_v18 = vpop.f32.mrb[7].mxu1 }
 0x48e   :  { %v657_v20 = vpop.f32.mrb[8].mxu1 }
 0x48f   :  { %v658_v21 = vadd.f32 %v657_v20, %v83_v19  ;;  %v2053_v22 = vpop.f32.mrb[9].mxu1 }
 0x491   :  { %v664_v23 = vsel %vm177_vm2, %v658_v21, -inf }
 0x492   :  { %665 = vmax.xlane.f32.xlu0 %v664_v23 }
 0x4a8   :  { %759 = vrot.lane.b32.xlu0 %v2465_v9, %s2341_s18 }
 0x4ac   :  { %835 = vrot.lane.b32.xlu0 %v2476_v12, %s2342_s19 }
 0x50b   :  { %v663_v24 = vpop.xlane.xlu1 %662 }
 0x50c   :  { %v667_v25 = vsub.f32 %v580_v7, %v663_v24 }
 0x50e   :  { %v669_v26 = vmul.f32 1.442695, %v667_v25 }
 0x510   :  { %2163 = vpow2.f32 %v669_v26 }
 0x51a   :  { %v2164_v27 = vpop.eup %2163 }
 0x51b   :  { %v673_v28 = vsel %vm177_vm2, %v2164_v27, 0.0 }
 0x51c   :  { %674 = vadd.xlane.f32.xlu1 %v673_v28  ;;  %v84_v28 = vld [vmem:[#allocation5 + $0x30] sm:$0xff] }
 0x51f   :  { %v666_v29 = vpop.xlane.xlu0 %665 }
 0x520   :  { %v668_v31 = vsub.f32 %v658_v21, %v666_v29  ;;  %v80_v21 = vld [vmem:[#allocation5 + $0x10] sm:$0xff] }
 0x522   :  { %v671_v32 = vmul.f32 1.442695, %v668_v31 }
 0x523   :  { %v760_v30 = vpop.permute.xlu0 %759 }
 0x524   :  { %2060 = vmatpush3.msra.mxu1 %v760_v30  ;;  %2165 = vpow2.f32 %v671_v32 }
 0x525   :  { %2069 = vmatprep.subr.mxu1 %v2335_v8 }
 0x527   :  { %v836_v40 = vpop.permute.xlu0 %835 }
 0x52d   :  { %683 = vrot.lane.b32.xlu1 %v2467_v10, %s2341_s18 }
 0x52e   :  { %v2166_v33 = vpop.eup %2165 }
 0x52f   :  { %v676_v34 = vsel %vm177_vm2, %v2166_v33, 0.0 }
 0x531   :  { %837 = vrot.lane.b32.xlu1 %v2467_v10, %s2343_s20 }
 0x535   :  { %915 = vrot.lane.b32.xlu1 %v2465_v9, %s2343_s20 }
 0x559   :  { %677 = vadd.xlane.f32.xlu1 %v676_v34 }
 0x56a   :  { %913 = vrot.lane.b32.xlu1 %v2484_v14, %s2342_s19 }
 0x5a9   :  { %v675_v35 = vpop.xlane.xlu1 %674 }
 0x5aa   :  { %2167 = vrcp.f32 %v675_v35 }
 0x5ad   :  { %v684_v36 = vpop.permute.xlu1 %683 }
 0x5ae   :  { %2055 = vmatpush3.msra.mxu0 %v684_v36 }
 0x5af   :  { %2064 = vmatprep.subr.mxu0 %v2335_v8 }
 0x5b1   :  { %v838_v39 = vpop.permute.xlu1 %837 }
 0x5b4   :  { %v2168_v37 = vpop.eup %2167 }
 0x5b5   :  { %v680_v38 = vmul.f32 %v2168_v37, %v2164_v27  ;;  %v916_v41 = vpop.permute.xlu1 %915 }
 0x5b7   :  { %2057 = vmatmul.mubr.msk.f32.vlgmr.msra.gmra.mrb[4].mxu0 %vm177_vm2, %v680_v38  ;;  %v1545_v45 = vrot.slane %v680_v38, 1  ;;  %v1550_v46 = vrot.slane %v680_v38, 2  ;;  %v1556_v47 = vrot.slane %v680_v38, 3  ;;  %v1562_v48 = vrot.slane %v680_v38, 4 }
 0x5b8   :  { %2065 = vmatpush3.xpose.msk.msra.mxu0 %vm177_vm2, %v838_v39  ;;  %2066 = vmatprep.mubr.msk.f32.mxu0 %vm2336_vm1, %v2335_v8  ;;  %v1568_v49 = vrot.slane %v680_v38, 5  ;;  %v1574_v50 = vrot.slane %v680_v38, 6  ;;  %v1580_v51 = vrot.slane %v680_v38, 7 }
 0x5b9   :  { %2074 = vmatprep.subr.mxu0 %v2335_v8 }
 0x5bb   :  { %2067 = vmatmul.mubr.msk.f32.vlgmr.msra.gmra.mrb[6].mxu0 %vm177_vm2, %v836_v40 }
 0x5bc   :  { %2076 = vmatprep.mubr.msk.f32.mxu0 %vm2336_vm1, %v2335_v8 }
 0x5e6   :  { %v678_v42 = vpop.xlane.xlu1 %677 }
 0x5e7   :  { %2169 = vrcp.f32 %v678_v42 }
 0x5ea   :  { %v914_v7 = vpop.permute.xlu1 %913 }
 0x5f1   :  { %v2170_v43 = vpop.eup %2169 }
 0x5f2   :  { %v682_v44 = vmul.f32 %v2170_v43, %v2166_v33 }
 0x5f4   :  { %2062 = vmatmul.mubr.msk.f32.vlgmr.msra.gmra.mrb[10].mxu1 %vm177_vm2, %v682_v44  ;;  %v1540_v52 = vrot.slane %v682_v44, 7  ;;  %v2581_v54 = vsel %vm1496_vm3, %v682_v44, %v1545_v45  ;;  %v1551_v55 = vrot.slane %v682_v44, 1  ;;  %v1557_v56 = vrot.slane %v682_v44, 2 }
 0x5f5   :  { %2070 = vmatpush3.xpose.msk.msra.mxu1 %vm177_vm2, %v916_v41  ;;  %2071 = vmatprep.mubr.msk.f32.mxu1 %vm2336_vm1, %v2335_v8  ;;  %v1563_v57 = vrot.slane %v682_v44, 3  ;;  %v1569_v58 = vrot.slane %v682_v44, 4  ;;  %v1575_v59 = vrot.slane %v682_v44, 5  ;;  %v1581_v60 = vrot.slane %v682_v44, 6 }
 0x5f6   :  { %2079 = vmatprep.subr.mxu1 %v2335_v8  ;;  %v2588_v4 = vsel %vm1496_vm3, %v1540_v52, %v680_v38  ;;  %v2591_v5 = vsel %vm1496_vm3, %v1551_v55, %v1550_v46  ;;  %v2594_v6 = vsel %vm1496_vm3, %v1557_v56, %v1556_v47 }
 0x5f7   :  { %v2597_v11 = vsel %vm1496_vm3, %v1563_v57, %v1562_v48  ;;  %v2600_v13 = vsel %vm1496_vm3, %v1569_v58, %v1568_v49  ;;  %v2603_v16 = vsel %vm1496_vm3, %v1575_v59, %v1574_v50  ;;  %v2606_v18 = vsel %vm1496_vm3, %v1581_v60, %v1580_v51 }
 0x5f8   :  { %2072 = vmatmul.mubr.msk.f32.vlgmr.msra.gmra.mrb[12].mxu1 %vm177_vm2, %v914_v7 }
 0x5f9   :  { %2081 = vmatprep.mubr.msk.f32.mxu1 %vm2336_vm1, %v2335_v8 }
 0x68a   :  { %v2611_v19 = vpop.f32.mrb[4].mxu0 }
 0x68b   :  { %v2058_v20 = vpop.f32.mrb[5].mxu0 }
 0x68e   :  { %v909_v22 = vpop.f32.mrb[6].mxu0 }
 0x68f   :  { %v910_v23 = vadd.f32 %v909_v22, %v80_v21  ;;  %v2068_v24 = vpop.f32.mrb[7].mxu0 }
 0x691   :  { %v991_v25 = vsel %vm177_vm2, %v910_v23, -inf }
 0x692   :  { %992 = vmax.xlane.f32.xlu0 %v991_v25 }
 0x6c7   :  { %v2614_v26 = vpop.f32.mrb[10].mxu1 }
 0x6c8   :  { %v2063_v27 = vpop.f32.mrb[11].mxu1 }
 0x6cb   :  { %v987_v29 = vpop.f32.mrb[12].mxu1 }
 0x6cc   :  { %v988_v30 = vadd.f32 %v987_v29, %v84_v28  ;;  %v2073_v31 = vpop.f32.mrb[13].mxu1 }
 0x6ce   :  { %v994_v32 = vsel %vm177_vm2, %v988_v30, -inf }
 0x6cf   :  { %995 = vmax.xlane.f32.xlu1 %v994_v32 }
 0x6e0   :  { %1013 = vrot.lane.b32.xlu1 %v2467_v10, %s2344_s22 }
 0x6e4   :  { %1167 = vrot.lane.b32.xlu1 %v2467_v10, %s2345_s23 }
 0x6e8   :  { %1245 = vrot.lane.b32.xlu1 %v2465_v9, %s2345_s23 }
 0x6ec   :  { %1243 = vrot.lane.b32.xlu1 %v2484_v14, %s2346_s24 }
 0x71f   :  { %v993_v33 = vpop.xlane.xlu0 %992 }
 0x720   :  { %v997_v34 = vsub.f32 %v910_v23, %v993_v33 }
 0x722   :  { %v999_v35 = vmul.f32 1.442695, %v997_v34 }
 0x724   :  { %2171 = vpow2.f32 %v999_v35 }
 0x72e   :  { %v2172_v36 = vpop.eup %2171 }
 0x72f   :  { %v1003_v37 = vsel %vm177_vm2, %v2172_v36, 0.0 }
 0x730   :  { %1004 = vadd.xlane.f32.xlu0 %v1003_v37 }
 0x746   :  { %1089 = vrot.lane.b32.xlu0 %v2465_v9, %s2344_s22 }
 0x75c   :  { %v996_v38 = vpop.xlane.xlu1 %995 }
 0x75d   :  { %v998_v39 = vsub.f32 %v988_v30, %v996_v38  ;;  %v81_v38 = vld [vmem:[#allocation5 + $0x18] sm:$0xff] }
 0x75f   :  { %v1001_v40 = vmul.f32 1.442695, %v998_v39 }
 0x760   :  { %v1014_v41 = vpop.permute.xlu1 %1013 }
 0x761   :  { %2173 = vpow2.f32 %v1001_v40  ;;  %2075 = vmatpush3.msra.mxu0 %v1014_v41 }
 0x762   :  { %2084 = vmatprep.subr.mxu0 %v2335_v8 }
 0x764   :  { %v1168_v47 = vpop.permute.xlu1 %1167 }
 0x768   :  { %v1246_v50 = vpop.permute.xlu1 %1245 }
 0x76b   :  { %v2174_v14 = vpop.eup %2173 }
 0x76c   :  { %v1006_v42 = vsel %vm177_vm2, %v2174_v14, 0.0  ;;  %v1244_v31 = vpop.permute.xlu1 %1243 }
 0x76d   :  { %1007 = vadd.xlane.f32.xlu0 %v1006_v42 }
 0x783   :  { %1165 = vrot.lane.b32.xlu0 %v2476_v12, %s2346_s24 }
 0x7bd   :  { %v1005_v43 = vpop.xlane.xlu0 %1004 }
 0x7be   :  { %2175 = vrcp.f32 %v1005_v43 }
 0x7c1   :  { %v1090_v44 = vpop.permute.xlu0 %1089 }
 0x7c2   :  { %2080 = vmatpush3.msra.mxu1 %v1090_v44  ;;  %v85_v44 = vld [vmem:[#allocation5 + $0x38] sm:$0xff] }
 0x7c3   :  { %2089 = vmatprep.subr.mxu1 %v2335_v8 }
 0x7c8   :  { %v2176_v45 = vpop.eup %2175 }
 0x7c9   :  { %v1010_v46 = vmul.f32 %v2176_v45, %v2172_v36 }
 0x7cb   :  { %2077 = vmatmul.mubr.msk.f32.vlgmr.msra.gmra.mrb[8].mxu0 %vm177_vm2, %v1010_v46  ;;  %v1617_v52 = vrot.slane %v1010_v46, 1  ;;  %v1622_v55 = vrot.slane %v1010_v46, 2  ;;  %v1628_v56 = vrot.slane %v1010_v46, 3  ;;  %v1634_v57 = vrot.slane %v1010_v46, 4 }
 0x7cc   :  { %2085 = vmatpush3.xpose.msk.msra.mxu0 %vm177_vm2, %v1168_v47  ;;  %2086 = vmatprep.mubr.msk.f32.mxu0 %vm2336_vm1, %v2335_v8  ;;  %v1640_v58 = vrot.slane %v1010_v46, 5  ;;  %v1646_v59 = vrot.slane %v1010_v46, 6  ;;  %v1652_v60 = vrot.slane %v1010_v46, 7 }
 0x7cd   :  { %2094 = vmatprep.subr.mxu0 %v2335_v8 }
 0x7fa   :  { %v1008_v48 = vpop.xlane.xlu0 %1007 }
 0x7fb   :  { %2177 = vrcp.f32 %v1008_v48 }
 0x7fe   :  { %v1166_v12 = vpop.permute.xlu0 %1165 }
 0x7ff   :  { %2087 = vmatmul.mubr.msk.f32.vlgmr.msra.gmra.mrb[10].mxu0 %vm177_vm2, %v1166_v12 }
 0x800   :  { %2096 = vmatprep.mubr.msk.f32.mxu0 %vm2336_vm1, %v2335_v8 }
 0x805   :  { %v2178_v49 = vpop.eup %2177 }
 0x806   :  { %v1012_v51 = vmul.f32 %v2178_v49, %v2174_v14 }
 0x808   :  { %2082 = vmatmul.mubr.msk.f32.vlgmr.msra.gmra.mrb[14].mxu1 %vm177_vm2, %v1012_v51  ;;  %v2643_v7 = vsel %vm1496_vm3, %v1012_v51, %v1617_v52  ;;  %v1623_v20 = vrot.slane %v1012_v51, 1  ;;  %v1629_v21 = vrot.slane %v1012_v51, 2  ;;  %v1635_v22 = vrot.slane %v1012_v51, 3 }
 0x809   :  { %2090 = vmatpush3.xpose.msk.msra.mxu1 %vm177_vm2, %v1246_v50  ;;  %2091 = vmatprep.mubr.msk.f32.mxu1 %vm2336_vm1, %v2335_v8  ;;  %v1641_v23 = vrot.slane %v1012_v51, 4  ;;  %v1647_v24 = vrot.slane %v1012_v51, 5  ;;  %v1653_v25 = vrot.slane %v1012_v51, 6  ;;  %v1614_v27 = vrot.slane %v1012_v51, 7 }
 0x80a   :  { %2099 = vmatprep.subr.mxu1 %v2335_v8  ;;  %v2650_v28 = vsel %vm1496_vm3, %v1623_v20, %v1622_v55  ;;  %v2653_v29 = vsel %vm1496_vm3, %v1629_v21, %v1628_v56  ;;  %v2656_v30 = vsel %vm1496_vm3, %v1635_v22, %v1634_v57 }
 0x80b   :  { %v2659_v32 = vsel %vm1496_vm3, %v1641_v23, %v1640_v58  ;;  %v2662_v33 = vsel %vm1496_vm3, %v1647_v24, %v1646_v59  ;;  %v2665_v34 = vsel %vm1496_vm3, %v1653_v25, %v1652_v60  ;;  %v2668_v35 = vsel %vm1496_vm3, %v1614_v27, %v1010_v46 }
 0x80c   :  { %2092 = vmatmul.mubr.msk.f32.vlgmr.msra.gmra.mrb[16].mxu1 %vm177_vm2, %v1244_v31 }
 0x80d   :  { %2101 = vmatprep.mubr.msk.f32.mxu1 %vm2336_vm1, %v2335_v8  ;;  %vm1612_vm1 = vcmask 982016  }
 0x89e   :  { %v1085_v36 = vpop.f32.mrb[8].mxu0 }
 0x89f   :  { %v2078_v37 = vpop.f32.mrb[9].mxu0 }
 0x8d2   :  { %v1239_v39 = vpop.f32.mrb[10].mxu0 }
 0x8d3   :  { %v1240_v40 = vadd.f32 %v1239_v39, %v81_v38  ;;  %v2088_v41 = vpop.f32.mrb[11].mxu0 }
 0x8d5   :  { %v1321_v14 = vsel %vm177_vm2, %v1240_v40, -inf }
 0x8d6   :  { %1322 = vmax.xlane.f32.xlu0 %v1321_v14 }
 0x8db   :  { %v1161_v42 = vpop.f32.mrb[14].mxu1 }
 0x8dc   :  { %v2083_v43 = vpop.f32.mrb[15].mxu1 }
 0x8df   :  { %v1317_v45 = vpop.f32.mrb[16].mxu1 }
 0x8e0   :  { %v1318_v46 = vadd.f32 %v1317_v45, %v85_v44  ;;  %v2093_v47 = vpop.f32.mrb[17].mxu1 }
 0x8e2   :  { %v1324_v48 = vsel %vm177_vm2, %v1318_v46, -inf }
 0x8e3   :  { %1325 = vmax.xlane.f32.xlu1 %v1324_v48 }
 0x8f4   :  { %1343 = vrot.lane.b32.xlu1 %v2467_v10, %s2347_s25 }
 0x8f8   :  { %1733 = vrot.lane.b32.xlu1 %v2611_v19, %s2332_s6 }
 0x8fc   :  { %1735 = vrot.lane.b32.xlu1 %v2614_v26, %s2332_s6 }
 0x900   :  { %1743 = vrot.lane.b32.xlu1 %v1161_v42, %s2348_s26 }
 0x963   :  { %v1323_v8 = vpop.xlane.xlu0 %1322 }
 0x964   :  { %v1327_v12 = vsub.f32 %v1240_v40, %v1323_v8 }
 0x966   :  { %v1329_v49 = vmul.f32 1.442695, %v1327_v12 }
 0x968   :  { %2179 = vpow2.f32 %v1329_v49  ;;  %v1761_v49 = vld [vmem:[#allocation8] sm:$0xff] }
 0x970   :  { %v1326_v50 = vpop.xlane.xlu1 %1325 }
 0x971   :  { %v1328_v51 = vsub.f32 %v1318_v46, %v1326_v50  ;;  %v1762_v50 = vld [vmem:[#allocation8 + $0x8] sm:$0xff] }
 0x972   :  { %v2180_v52 = vpop.eup %2179 }
 0x973   :  { %v1331_v55 = vmul.f32 1.442695, %v1328_v51  ;;  %v1333_v56 = vsel %vm177_vm2, %v2180_v52, 0.0  ;;  %v2123_v51 = vpack.c.bf16 %v1762_v50, %v1761_v49 }
 0x974   :  { %1334 = vadd.xlane.f32.xlu0 %v1333_v56  ;;  %v1344_v10 = vpop.permute.xlu1 %1343 }
 0x975   :  { %2181 = vpow2.f32 %v1331_v55  ;;  %2095 = vmatpush3.msra.mxu0 %v1344_v10  ;;  %v1764_v55 = vld [vmem:[#allocation8 + $0x18] sm:$0xff] }
 0x976   :  { %2124 = vmatprep.subr.bf16.mxu0 %v2123_v51 }
 0x97f   :  { %v2182_v19 = vpop.eup %2181 }
 0x980   :  { %v1336_v26 = vsel %vm177_vm2, %v2182_v19, 0.0 }
 0x981   :  { %1337 = vadd.xlane.f32.xlu0 %v1336_v26 }
 0x997   :  { %1419 = vrot.lane.b32.xlu0 %v2465_v9, %s2347_s25 }
 0x99b   :  { %1741 = vrot.lane.b32.xlu0 %v1085_v36, %s2348_s26 }
 0xa01   :  { %v1335_v57 = vpop.xlane.xlu0 %1334 }
 0xa02   :  { %2183 = vrcp.f32 %v1335_v57 }
 0xa0c   :  { %v2184_v58 = vpop.eup %2183 }
 0xa0d   :  { %v1340_v59 = vmul.f32 %v2184_v58, %v2180_v52  ;;  %v1763_v52 = vld [vmem:[#allocation8 + $0x10] sm:$0xff] }
 0xa0e   :  { %v1338_v60 = vpop.xlane.xlu0 %1337  ;;  %v2127_v56 = vpack.c.bf16 %v1764_v55, %v1763_v52 }
 0xa0f   :  { %2185 = vrcp.f32 %v1338_v60  ;;  %2097 = vmatmul.mubr.msk.f32.vlgmr.msra.gmra.mrb[12].mxu0 %vm177_vm2, %v1340_v59  ;;  %v1663_v23 = vrot.slane %v1340_v59, 1  ;;  %v1668_v24 = vrot.slane %v1340_v59, 2  ;;  %v1674_v25 = vrot.slane %v1340_v59, 3 }
 0xa10   :  { %v1680_v27 = vrot.slane %v1340_v59, 4  ;;  %v1686_v31 = vrot.slane %v1340_v59, 5  ;;  %v1692_v9 = vrot.slane %v1340_v59, 6  ;;  %v1698_v37 = vrot.slane %v1340_v59, 7  ;;  %2126 = vmatpush3.bf16.msra.mxu0 %v2123_v51 }
 0xa11   :  { %2128 = vmatprep.subr.bf16.mxu0 %v2127_v56 }
 0xa12   :  { %v1420_v20 = vpop.permute.xlu0 %1419 }
 0xa13   :  { %2100 = vmatpush3.msra.mxu1 %v1420_v20 }
 0xa14   :  { %2130 = vmatpush3.bf16.msra.mxu0 %v2127_v56 }
 0xa19   :  { %v2186_v21 = vpop.eup %2185 }
 0xa1a   :  { %v1342_v22 = vmul.f32 %v2186_v21, %v2182_v19 }
 0xa1c   :  { %2102 = vmatmul.mubr.msk.f32.vlgmr.msra.gmra.mrb[18].mxu1 %vm177_vm2, %v1342_v22  ;;  %v1658_v36 = vrot.slane %v1342_v22, 7  ;;  %v1664_v38 = vsel %vm1496_vm3, %v1342_v22, %v1663_v23  ;;  %v1669_v39 = vrot.slane %v1342_v22, 1  ;;  %v1675_v40 = vrot.slane %v1342_v22, 2 }
 0xa1d   :  { %v1681_v41 = vrot.slane %v1342_v22, 3  ;;  %v1687_v14 = vrot.slane %v1342_v22, 4  ;;  %v1693_v42 = vrot.slane %v1342_v22, 5  ;;  %v1699_v43 = vrot.slane %v1342_v22, 6 }
 0xa1e   :  { %v1659_v44 = vsel %vm1496_vm3, %v1658_v36, %v1340_v59  ;;  %v1670_v45 = vsel %vm1496_vm3, %v1669_v39, %v1668_v24  ;;  %v1676_v46 = vsel %vm1496_vm3, %v1675_v40, %v1674_v25 }
 0xa1f   :  { %v1682_v47 = vsel %vm1496_vm3, %v1681_v41, %v1680_v27  ;;  %v1688_v48 = vsel %vm1496_vm3, %v1687_v14, %v1686_v31  ;;  %v1694_v8 = vsel %vm1496_vm3, %v1693_v42, %v1692_v9  ;;  %v1700_v12 = vsel %vm1496_vm3, %v1699_v43, %v1698_v37 }
 0xae2   :  { %v1415_v10 = vpop.f32.mrb[12].mxu0 }
 0xae3   :  { %1749 = vrot.lane.b32.xlu0 %v1415_v10, %s2349_s27  ;;  %v2098_v19 = vpop.f32.mrb[13].mxu0 }
 0xae7   :  { %1501 = vrot.lane.b32.xlu0 %v2519_v53, %s2332_s6  ;;  %v1734_v53 = vpop.permute.xlu1 %1733 }
 0xaeb   :  { %1507 = vrot.lane.b32.xlu0 %v2524_v61, %s2348_s26  ;;  %v1742_v61 = vpop.permute.xlu0 %1741 }
 0xaef   :  { %1513 = vrot.lane.b32.xlu0 %v2527_v62, %s2349_s27  ;;  %v1491_v26 = vpop.f32.mrb[18].mxu1  ;;  %v1755_v62 = vsel %vm177_vm2, %v2550_v15, %v1734_v53 }
 0xaf0   :  { %1751 = vrot.lane.b32.xlu1 %v1491_v26, %s2349_s27  ;;  %v2103_v57 = vpop.f32.mrb[19].mxu1 }
 0xaf3   :  { %1519 = vrot.lane.b32.xlu0 %v2530_v63, %s2350_s28  ;;  %v1757_v63 = vsel %vm1587_vm5, %v1755_v62, %v1742_v61 }
 0xaf4   :  { %1619 = vrot.lane.b32.xlu1 %v2643_v7, %s2332_s6  ;;  %s2351_s6 = smov [#allocation11]  }
 0xaf5   :  { %s1924_s29 = sshll.u32 %s2351_s6, 4  ;;  %s1925_s29 = int_to_ptr.vmem [resolvable:$true] %s1924_s29 }
 0xaf6   :  { %s2275_s0 = scalar_lea.vmem %s1925_s29, 64  ;;  %p2280_p5 = scmp.lt.s32.totalorder %s1925_s29, %s1925_s29 }
 0xaf7   :  { %1525 = vrot.lane.b32.xlu0 %v2533_v0, %s2347_s25  ;;  %p2276_p4 = scmp.ne.s32.totalorder %s1925_s29, %s2275_s0  ;;  %p2281_p6 = scmp.lt.s32.totalorder %s2275_s0, %s2275_s0 }
 0xaf8   :  { %1625 = vrot.lane.b32.xlu1 %v2650_v28, %s2348_s26 }
 0xaf9   :  { %p2282_p7 = por %p2281_p6, %p2280_p5 }
 0xafb   :  { %1531 = vrot.lane.b32.xlu0 %v2536_v1, %s2344_s22  ;;  %p2283_p8 = pnand %p2282_p7, %p2276_p4 }
 0xafc   :  { %1631 = vrot.lane.b32.xlu1 %v2653_v29, %s2349_s27 }
 0xaff   :  { %1537 = vrot.lane.b32.xlu0 %v2539_v2, %s2341_s18  ;;  %v1736_v2 = vpop.permute.xlu1 %1735 }
 0xb00   :  { %1637 = vrot.lane.b32.xlu1 %v2656_v30, %s2350_s28 }
 0xb03   :  { %1542 = vrot.lane.b32.xlu0 %v2588_v4, %s2338_s30 }
 0xb04   :  { %1643 = vrot.lane.b32.xlu1 %v2659_v32, %s2347_s25 }
 0xb07   :  { %1547 = vrot.lane.b32.xlu0 %v2581_v54, %s2345_s23 }
 0xb08   :  { %1649 = vrot.lane.b32.xlu1 %v2662_v33, %s2344_s22 }
 0xb0b   :  { %1553 = vrot.lane.b32.xlu0 %v2591_v5, %s2343_s20  ;;  %v1744_v5 = vpop.permute.xlu1 %1743 }
 0xb0c   :  { %1655 = vrot.lane.b32.xlu1 %v2665_v34, %s2341_s18 }
 0xb0f   :  { %1559 = vrot.lane.b32.xlu0 %v2594_v6, %s2339_s1  ;;  %v1756_v6 = vsel %vm177_vm2, %v2552_v17, %v1736_v2 }
 0xb10   :  { %1660 = vrot.lane.b32.xlu1 %v1659_v44, %s2338_s30 }
 0xb13   :  { %1565 = vrot.lane.b32.xlu0 %v2597_v11, %s2337_s3 }
 0xb14   :  { %1665 = vrot.lane.b32.xlu1 %v1664_v38, %s2345_s23 }
 0xb17   :  { %1571 = vrot.lane.b32.xlu0 %v2600_v13, %s2346_s24  ;;  %v1758_v13 = vsel %vm1587_vm5, %v1756_v6, %v1744_v5 }
 0xb18   :  { %1671 = vrot.lane.b32.xlu1 %v1670_v45, %s2343_s20 }
 0xb1b   :  { %1577 = vrot.lane.b32.xlu0 %v2603_v16, %s2342_s19 }
 0xb1c   :  { %1677 = vrot.lane.b32.xlu1 %v1676_v46, %s2339_s1 }
 0xb1f   :  { %1583 = vrot.lane.b32.xlu0 %v2606_v18, %s2340_s17 }
 0xb20   :  { %1683 = vrot.lane.b32.xlu1 %v1682_v47, %s2337_s3 }
 0xb24   :  { %1689 = vrot.lane.b32.xlu1 %v1688_v48, %s2346_s24 }
 0xb28   :  { %1695 = vrot.lane.b32.xlu1 %v1694_v8, %s2342_s19 }
 0xb2c   :  { %1701 = vrot.lane.b32.xlu1 %v1700_v12, %s2340_s17 }
 0xb55   :  { %v1750_v0 = vpop.permute.xlu0 %1749 }
 0xb56   :  { %v1759_v1 = vsel %vm1589_vm4, %v1757_v63, %v1750_v0 }
 0xb57   :  { %2112 = vmatprep.mubr.msk.f32.mxu0 %vm90_vm0, %v1759_v1 }
 0xb59   :  { %v1502_v54 = vpop.permute.xlu0 %1501 }
 0xb5a   :  { %v1586_v37 = vsel %vm177_vm2, %v2542_v3, %v1502_v54 }
 0xb5d   :  { %v1508_v4 = vpop.permute.xlu0 %1507 }
 0xb5e   :  { %v1588_v38 = vsel %vm1587_vm5, %v1586_v37, %v1508_v4 }
 0xb61   :  { %v1514_v11 = vpop.permute.xlu0 %1513 }
 0xb62   :  { %v1752_v16 = vpop.permute.xlu1 %1751  ;;  %v1590_v41 = vsel %vm1589_vm4, %v1588_v38, %v1514_v11 }
 0xb63   :  { %v1760_v15 = vsel %vm1589_vm4, %v1758_v13, %v1752_v16 }
 0xb64   :  { %2113 = vmatmul.mubr.msk.f32.vlgmr.msra.gmra.mrb[14].mxu0 %vm90_vm0, %v1760_v15 }
 0xb65   :  { %v1520_v18 = vpop.permute.xlu0 %1519 }
 0xb66   :  { %v1620_v7 = vpop.permute.xlu1 %1619  ;;  %v1591_v42 = vsel %vm90_vm0, %v1590_v41, %v1520_v18 }
 0xb67   :  { %v1704_v36 = vsel %vm177_vm2, %v2668_v35, %v1620_v7 }
 0xb69   :  { %v1526_v28 = vpop.permute.xlu0 %1525 }
 0xb6a   :  { %v1626_v29 = vpop.permute.xlu1 %1625  ;;  %v1593_v3 = vsel %vm1592_vm6, %v1591_v42, %v1526_v28 }
 0xb6b   :  { %v1705_v39 = vsel %vm1587_vm5, %v1704_v36, %v1626_v29 }
 0xb6d   :  { %v1532_v30 = vpop.permute.xlu0 %1531 }
 0xb6e   :  { %v1632_v32 = vpop.permute.xlu1 %1631  ;;  %v1595_v35 = vsel %vm1594_vm7, %v1593_v3, %v1532_v30 }
 0xb6f   :  { %v1706_v14 = vsel %vm1589_vm4, %v1705_v39, %v1632_v32 }
 0xb71   :  { %v1538_v33 = vpop.permute.xlu0 %1537 }
 0xb72   :  { %v1638_v34 = vpop.permute.xlu1 %1637  ;;  %v1597_v48 = vsel %vm1596_vm8, %v1595_v35, %v1538_v33 }
 0xb73   :  { %v1707_v43 = vsel %vm90_vm0, %v1706_v14, %v1638_v34 }
 0xb75   :  { %v1543_v58 = vpop.permute.xlu0 %1542 }
 0xb76   :  { %v1644_v59 = vpop.permute.xlu1 %1643  ;;  %v1599_v12 = vsel %vm1598_vm9, %v1597_v48, %v1543_v58 }
 0xb77   :  { %v1708_v44 = vsel %vm1592_vm6, %v1707_v43, %v1644_v59 }
 0xb79   :  { %v1548_v60 = vpop.permute.xlu0 %1547 }
 0xb7a   :  { %v1650_v17 = vpop.permute.xlu1 %1649  ;;  %v1601_v50 = vsel %vm1600_vm10, %v1599_v12, %v1548_v60 }
 0xb7b   :  { %v1709_v45 = vsel %vm1594_vm7, %v1708_v44, %v1650_v17 }
 0xb7d   :  { %v1554_v20 = vpop.permute.xlu0 %1553 }
 0xb7e   :  { %v1656_v21 = vpop.permute.xlu1 %1655  ;;  %v1603_v52 = vsel %vm1602_vm11, %v1601_v50, %v1554_v20 }
 0xb7f   :  { %v1710_v8 = vsel %vm1596_vm8, %v1709_v45, %v1656_v21 }
 0xb81   :  { %v1560_v23 = vpop.permute.xlu0 %1559 }
 0xb82   :  { %v1661_v22 = vpop.permute.xlu1 %1660  ;;  %v1605_v10 = vsel %vm1604_vm12, %v1603_v52, %v1560_v23 }
 0xb83   :  { %v1711_v49 = vsel %vm1598_vm9, %v1710_v8, %v1661_v22 }
 0xb85   :  { %v1566_v25 = vpop.permute.xlu0 %1565 }
 0xb86   :  { %v1666_v24 = vpop.permute.xlu1 %1665  ;;  %v1607_v26 = vsel %vm1606_vm13, %v1605_v10, %v1566_v25 }
 0xb87   :  { %v1712_v51 = vsel %vm1600_vm10, %v1711_v49, %v1666_v24 }
 0xb89   :  { %v1572_v9 = vpop.permute.xlu0 %1571 }
 0xb8a   :  { %v1672_v27 = vpop.permute.xlu1 %1671  ;;  %v1609_v61 = vsel %vm1608_vm14, %v1607_v26, %v1572_v9 }
 0xb8b   :  { %v1713_v55 = vsel %vm1602_vm11, %v1712_v51, %v1672_v27 }
 0xb8d   :  { %v1578_v46 = vpop.permute.xlu0 %1577 }
 0xb8e   :  { %v1678_v31 = vpop.permute.xlu1 %1677  ;;  %v1611_v63 = vsel %vm1610_vm15, %v1609_v61, %v1578_v46 }
 0xb8f   :  { %v1714_v19 = vsel %vm1604_vm12, %v1713_v55, %v1678_v31 }
 0xb91   :  { %v1584_v57 = vpop.permute.xlu0 %1583 }
 0xb92   :  { %v1684_v40 = vpop.permute.xlu1 %1683  ;;  %v1613_v2 = vsel %vm1612_vm1, %v1611_v63, %v1584_v57 }
 0xb93   :  { %v1715_v53 = vsel %vm1606_vm13, %v1714_v19, %v1684_v40 }
 0xb96   :  { %v1690_v47 = vpop.permute.xlu1 %1689 }
 0xb97   :  { %v1716_v62 = vsel %vm1608_vm14, %v1715_v53, %v1690_v47 }
 0xb9a   :  { %v1696_v56 = vpop.permute.xlu1 %1695 }
 0xb9b   :  { %v1717_v0 = vsel %vm1610_vm15, %v1716_v62, %v1696_v56 }
 0xb9e   :  { %v1702_v1 = vpop.permute.xlu1 %1701 }
 0xb9f   :  { %v1718_v54 = vsel %vm1612_vm1, %v1717_v0, %v1702_v1 }
 0xba0   :  { %v1721_v4 = vcombine.low %v1613_v2, %v1718_v54 }
 0xba2   :  { %1965 = vst.sshfl [vmem:[#allocation11] sm:$0x33 pattern:$0x76325410] %v1721_v4 }
 0xc37   :  { %v2114_v5 = vpop.f32.mrb[14].mxu0 }
 0xc38   :  { %v1837_v6 = vpop.f32.mrb[15].mxu0  ;;  %v1873_v11 = vrot.slane %v2114_v5, 4  ;;  %v1879_v13 = vrot.slane %v2114_v5, 5  ;;  %v1857_v16 = vrot.slane %v2114_v5, 1  ;;  %v1885_v15 = vrot.slane %v2114_v5, 6 }
 0xc39   :  { %v1872_v18 = vrot.slane %v1837_v6, 5  ;;  %v1851_v7 = vrot.slane %v1837_v6, 1  ;;  %v1878_v28 = vrot.slane %v1837_v6, 6  ;;  %v1856_v29 = vrot.slane %v1837_v6, 2 }
 0xc3a   :  { %v1884_v30 = vrot.slane %v1837_v6, 7  ;;  %v1862_v32 = vrot.slane %v1837_v6, 3  ;;  %v1863_v33 = vrot.slane %v2114_v5, 2  ;;  %v1848_v34 = vrot.slane %v2114_v5, 7 }
 0xc3b   :  { %v1874_v58 = vsel %vm1496_vm3, %v1873_v11, %v1872_v18  ;;  %v1852_v59 = vsel %vm1496_vm3, %v2114_v5, %v1851_v7  ;;  %v1880_v60 = vsel %vm1496_vm3, %v1879_v13, %v1878_v28  ;;  %v1858_v17 = vsel %vm1496_vm3, %v1857_v16, %v1856_v29 }
 0xc3c   :  { %1875 = vrot.lane.b32.xlu1 %v1874_v58, %s2350_s28  ;;  %1853 = vrot.lane.b32.xlu0 %v1852_v59, %s2350_s28  ;;  %v1886_v20 = vsel %vm1496_vm3, %v1885_v15, %v1884_v30  ;;  %v1864_v21 = vsel %vm1496_vm3, %v1863_v33, %v1862_v32  ;;  %v1849_v22 = vsel %vm1496_vm3, %v1848_v34, %v1837_v6  ;;  %v1868_v23 = vrot.slane %v1837_v6, 4 }
 0xc3d   :  { %v1869_v24 = vrot.slane %v2114_v5, 3 }
 0xc3e   :  { %2286 = shalt.err (!%p2283_p8)
}
 0xc3f   :  { %s2287_s8 = scalar_lea.hbm %s2820_s5, 64 }
 0xc40   :  { %p2288_p9 = scmp.ne.s32.totalorder %s2820_s5, %s2287_s8  ;;  %p2291_p10 = scmp.lt.u32.totalorder %s2287_s8, %s2820_s5 }
 0xc42   :  { %p2293_p11 = pnand %p2291_p10, %p2288_p9 }
 0xc44   :  { %2296 = shalt.err (!%p2293_p11)
}
 0xc45   :  { %1927 = dma.vmem_to_hbm [thread:$0]  %s1925_s29, 64, %s2820_s5, [#allocation12]   ;;  %v1870_v25 = vsel %vm1496_vm3, %v1869_v24, %v1868_v23  ;;  %1881 = vrot.lane.b32.xlu1 %v1880_v60, %s2338_s30  ;;  %1859 = vrot.lane.b32.xlu0 %v1858_v17, %s2338_s30 }
 0xc46   :  { %s2352_s15 = smov [#allocation10]  }
 0xc47   :  { %s1914_s5 = sshll.u32 %s2352_s15, 4  ;;  %s1915_s5 = int_to_ptr.vmem [resolvable:$true] %s1914_s5 }
 0xc48   :  { %s2297_s2 = scalar_lea.vmem %s1915_s5, 64  ;;  %p2302_p13 = scmp.lt.s32.totalorder %s1915_s5, %s1915_s5 }
 0xc49   :  { %1887 = vrot.lane.b32.xlu1 %v1886_v20, %s2337_s3  ;;  %1865 = vrot.lane.b32.xlu0 %v1864_v21, %s2337_s3  ;;  %p2298_p12 = scmp.ne.s32.totalorder %s1915_s5, %s2297_s2  ;;  %p2303_p0 = scmp.lt.s32.totalorder %s2297_s2, %s2297_s2 }
 0xc4b   :  { %p2304_p1 = por %p2303_p0, %p2302_p13 }
 0xc4d   :  { %p2305_p2 = pnand %p2304_p1, %p2298_p12 }
 0xcae   :  { %v1854_v27 = vpop.permute.xlu0 %1853  ;;  %v1876_v31 = vpop.permute.xlu1 %1875 }
 0xcaf   :  { %v1890_v36 = vsel %vm90_vm0, %v1849_v22, %v1854_v27  ;;  %v1893_v38 = vsel %vm90_vm0, %v1870_v25, %v1876_v31 }
 0xcb7   :  { %v1860_v9 = vpop.permute.xlu0 %1859  ;;  %v1882_v37 = vpop.permute.xlu1 %1881 }
 0xcb8   :  { %v1891_v39 = vsel %vm1598_vm9, %v1890_v36, %v1860_v9  ;;  %v1894_v40 = vsel %vm1598_vm9, %v1893_v38, %v1882_v37 }
 0xcbb   :  { %v1866_v41 = vpop.permute.xlu0 %1865  ;;  %v1888_v14 = vpop.permute.xlu1 %1887 }
 0xcbc   :  { %v1892_v42 = vsel %vm1606_vm13, %v1891_v39, %v1866_v41  ;;  %v1895_v43 = vsel %vm1606_vm13, %v1894_v40, %v1888_v14 }
 0xcbd   :  { %v1898_v3 = vcombine.low %v1892_v42, %v1895_v43 }
 0xcbf   :  { %1968 = vst.sshfl [vmem:[#allocation10] sm:$0x33 pattern:$0x76325410] %v1898_v3 }
 0xcc0   :  { %2308 = shalt.err (!%p2305_p2)
}
 0xcc1   :  { %s2309_s30 = scalar_lea.hbm %s2819_s4, 64 }
 0xcc2   :  { %p2310_p3 = scmp.ne.s32.totalorder %s2819_s4, %s2309_s30  ;;  %p2313_p4 = scmp.lt.u32.totalorder %s2309_s30, %s2819_s4 }
 0xcc4   :  { %p2315_p5 = pnand %p2313_p4, %p2310_p3 }
 0xcc6   :  { %2318 = shalt.err (!%p2315_p5)
}
 0xcc7   :  { %1917 = dma.vmem_to_hbm [thread:$0]  %s1915_s5, 64, %s2819_s4, [#allocation4]  }
 0xcc8   :  { %2325 = dma.done.wait [#allocation4], 64  }
 0xcc9   :  { %2326 = vsyncadd [#allocation4], 4294967232 }
 0xcca   :  { %2327 = dma.done.wait [#allocation12], 64  }
 0xccb   :  { %2328 = vsyncadd [#allocation12], 4294967232 }
 0xccc   :  { %1934 = vsyncpa [#allocation3], 1 }
 0xccd   :  { %1935 = vsyncpa [#allocation6], 1 }
 0xcce   :  { %1936 = vsyncpa [#allocation9], 1 }
 0xccf   :  { %1937 = vsyncpa [#allocation4], 1 }
 0xcd0   :  { %1938 = vsyncpa [#allocation12], 1 }

</bundles_post_ra>
